<compile_context>
chip_gen: v7x
topology: tpu7x:2x2x1
jax: 0.10.0
libtpu: 0.0.40
codegen_flags: <defaults>
</compile_context>

<pallas_src>
import functools

import jax
import jax.numpy as jnp
from jax.experimental import pallas as pl
from jax.experimental.pallas import tpu as pltpu

BN_EPS = 1e-5
# bf16 MXU operands + f32 accumulation.  Set to jnp.float32 for exact f32
# reference semantics (accuracy knob, flagged in the checks below).
COMPUTE_DTYPE = jnp.bfloat16


def _round_up(x, m):
    return (x + m - 1) // m * m


# ----------------------------------------------------------------------------
# Fused kernel: (conv3x3 + folded-BN + ReLU) x 2 on one image, one c_out tile
# ----------------------------------------------------------------------------
def _double_conv_kernel(x1_ref, v_ref, w1_ref, b1_ref, w2_ref, b2_ref,
                        o_ref, h_ref, *, R, B, taps1, taps2):
    """
    x1_ref: stage-1 input slab, channels on lanes
              im2col path : (R, 9*c_in)
              9-tap  path : (rows_x, c_in)  zero-padded raster
    v_ref : (R, 1)   1.0 where a raster row is a real pixel, 0.0 on wrap cols
    w1_ref: (len(taps1), K1, c_mid_p)    BN-scale-folded conv1 taps
    b1_ref: (1, c_mid_p)                 folded BN bias
    w2_ref: (9, c_mid_p, tile)           BN-scale-folded conv2 taps (one tile)
    b2_ref: (1, tile)
    o_ref : (R, tile)                    conv2 output, raster layout, f32
    h_ref : (rows_h, c_mid_p)            VMEM scratch (COMPUTE_DTYPE): conv1
                                         output as a zero-padded raster whose
                                         real rows start at aligned base B
    """
    c_mid = h_ref.shape[-1]
    rows_h = h_ref.shape[0]
    c_out = o_ref.shape[-1]

    # ---- stage 1: conv1 + BN1 + ReLU -- once per image (c_out tile 0) -------
    # Invariant: the c_out-tile grid axis MUST stay "arbitrary" so h_ref
    # persists across j > 0 tiles of the same image.
    @pl.when(pl.program_id(1) == 0)
    def _():
        acc = jnp.zeros((R, c_mid), jnp.float32)
        for k, off in enumerate(taps1):
            acc = acc + jnp.dot(x1_ref[pl.ds(off, R), :], w1_ref[k],
                                preferred_element_type=jnp.float32)
        y = jnp.maximum(acc + b1_ref[...], 0.0) * v_ref[...]
        # Zero only the halo rows; the middle R rows are fully overwritten.
        h_ref[pl.ds(0, B), :] = jnp.zeros((B, c_mid), h_ref.dtype)
        h_ref[pl.ds(B + R, rows_h - B - R), :] = jnp.zeros(
            (rows_h - B - R, c_mid), h_ref.dtype)
        h_ref[pl.ds(B, R), :] = y.astype(h_ref.dtype)   # aligned, lane-dense

    # ---- stage 2: conv2 + BN2 + ReLU for the current c_out tile -------------
    acc2 = jnp.zeros((R, c_out), jnp.float32)
    for k, off in enumerate(taps2):
        acc2 = acc2 + jnp.dot(h_ref[pl.ds(off, R), :], w2_ref[k],
                              preferred_element_type=jnp.float32)
    o_ref[...] = jnp.maximum(acc2 + b2_ref[...], 0.0)


# ----------------------------------------------------------------------------
# Wrapper
# ----------------------------------------------------------------------------
@jax.jit
def double_conv(x, w1, s1, b1, w2, s2, b2):
    """x: (N, C_in, H, W) f32.  w*: (9, C_in*, C_out*) f32.  s*/b*: (1, C_out*)."""
    n, c_in, h, w = x.shape
    c_mid = w1.shape[-1]
    c_out = w2.shape[-1]
    wp = w + 2                                   # raster row width (incl. wrap)
    r = h * wp                                   # raster rows computed per image

    # Lane-dense channel counts (multiples of 128): unmasked stores, full MXU
    # N tile.  Padded channels are zero and cropped afterwards.
    c_mid_p = _round_up(c_mid, 128)
    c_out_p = _round_up(c_out, 128)
    tile = 256 if c_out_p % 256 == 0 else 128    # 128 already fills v5e's MXU
    n_tiles = c_out_p // tile

    # Fold the BN scale into the conv weights (in f32), pad channels, cast.
    w1f = w1.astype(jnp.float32) * s1.reshape(1, 1, c_mid)
    w1f = jnp.pad(w1f, ((0, 0), (0, 0), (0, c_mid_p - c_mid)))
    b1p = jnp.pad(b1.reshape(1, c_mid).astype(jnp.float32),
                  ((0, 0), (0, c_mid_p - c_mid)))
    w2f = w2.astype(jnp.float32) * s2.reshape(1, 1, c_out)
    w2f = jnp.pad(w2f, ((0, 0), (0, c_mid_p - c_mid), (0, c_out_p - c_out)))
    w2k = w2f.astype(COMPUTE_DTYPE)
    b2p = jnp.pad(b2.reshape(1, c_out).astype(jnp.float32),
                  ((0, 0), (0, c_out_p - c_out)))

    # NCHW -> zero-padded NHWC raster, channels on lanes.
    xp = jnp.transpose(x, (0, 2, 3, 1))
    xp = jnp.pad(xp, ((0, 0), (1, 1), (1, 1), (0, 0)))
    xflat = xp.reshape(n, (h + 2) * wp, c_in)

    im2col = 9 * c_in <= 128        # tiny c_in: fold the taps into contraction
    if im2col:
        # The (R, 9*c_in) im2col slab lane-pads the same as (R, c_in), so it
        # costs no extra VMEM/DMA and conv1 becomes a single MXU matmul.
        xflat = jnp.pad(xflat, ((0, 0), (0, 2), (0, 0)))   # cover wrap-row taps
        cols = [xflat[:, (k // 3) * wp + (k % 3):(k // 3) * wp + (k % 3) + r, :]
                for k in range(9)]
        x1 = jnp.concatenate(cols, axis=-1).astype(COMPUTE_DTYPE)
        taps1 = (0,)
        w1k = w1f.reshape(1, 9 * c_in, c_mid_p).astype(COMPUTE_DTYPE)
        x_rows, x_lanes = r, 9 * c_in
    else:
        x_rows = _round_up(r + 2 * wp + 2, 8)
        x_lanes = c_in
        x1 = jnp.pad(xflat, ((0, 0), (0, x_rows - (h + 2) * wp), (0, 0)))
        x1 = x1.astype(COMPUTE_DTYPE)
        taps1 = tuple((k // 3) * wp + (k % 3) for k in range(9))
        w1k = w1f.astype(COMPUTE_DTYPE)

    # 1.0 for raster rows that are real pixels, 0.0 for the 2 wrap columns.
    valid = ((jnp.arange(r) % wp) < w).astype(jnp.float32).reshape(r, 1)

    # Scratch layout: conv1 raster rows stored at an aligned base so the big
    # stage-1 store is unmasked; stage-2 taps shift by (base - wp - 1) so the
    # conv halo lands in the zeroed pad rows.
    align = 16 if COMPUTE_DTYPE == jnp.bfloat16 else 8
    base = _round_up(wp + 1, align)
    rows_h = _round_up(base + r + wp + 1, align)
    taps2 = tuple((k // 3) * wp + (k % 3) + (base - wp - 1) for k in range(9))

    # Explicit VMEM budget (double-buffered blocks + scratch) with headroom,
    # capped at 48 MiB (safe on v5e/v6e 128 MiB and v7x 64 MiB physical).
    # TODO(synk): for very large H*W*c_mid, add a raster-row grid axis with a
    # halo (also gives v7x's 2nd TensorCore work when N is small).
    bpe = jnp.dtype(COMPUTE_DTYPE).itemsize

    def _blk(rows, lanes, itemsize):
        return _round_up(rows, 8) * _round_up(lanes, 128) * itemsize

    est = (2 * _blk(x_rows, x_lanes, bpe)                     # stage-1 input
           + 2 * _blk(r, 1, 4)                                # valid mask
           + 2 * len(taps1) * _blk(w1k.shape[1], c_mid_p, bpe)
           + 2 * _blk(1, c_mid_p, 4)
           + 2 * 9 * _blk(c_mid_p, tile, bpe)                 # conv2 weights
           + 2 * _blk(1, tile, 4)
           + 2 * _blk(r, tile, 4)                             # output block
           + _blk(rows_h, c_mid_p, bpe))                      # scratch
    vmem_limit = int(min(48 * 2 ** 20, max(16 * 2 ** 20, 2 * est)))

    w2_spec = pl.BlockSpec((9, c_mid_p, tile), lambda i, j: (0, 0, j))
    if n_tiles >= 3:        # deepen the weight pipeline when DMA is exposed
        w2_spec = pl.BlockSpec((9, c_mid_p, tile), lambda i, j: (0, 0, j),
                               pipeline_mode=pl.Buffered(3))

    out = pl.pallas_call(
        functools.partial(_double_conv_kernel, R=r, B=base,
                          taps1=taps1, taps2=taps2),
        out_shape=jax.ShapeDtypeStruct((n, r, c_out_p), jnp.float32),
        grid=(n, n_tiles),
        in_specs=[
            pl.BlockSpec((None, x_rows, x_lanes), lambda i, j: (i, 0, 0)),
            pl.BlockSpec((r, 1), lambda i, j: (0, 0)),
            pl.BlockSpec(w1k.shape, lambda i, j: (0, 0, 0)),
            pl.BlockSpec((1, c_mid_p), lambda i, j: (0, 0)),
            w2_spec,
            pl.BlockSpec((1, tile), lambda i, j: (0, j)),
        ],
        out_specs=pl.BlockSpec((None, r, tile), lambda i, j: (i, 0, j)),
        scratch_shapes=[pltpu.VMEM((rows_h, c_mid_p), COMPUTE_DTYPE)],
        compiler_params=pltpu.CompilerParams(
            # Batch shards across v7x's two TensorCores; the c_out-tile axis
            # MUST stay "arbitrary" (h_ref persists across its iterations).
            dimension_semantics=("parallel", "arbitrary"),
            vmem_limit_bytes=vmem_limit,
        ),
    )(x1, valid, w1k, b1p, w2k, b2p)

    # Crop padded channels + wrap columns, back to NCHW.  (For chained
    # double_conv blocks, keeping NHWC/raster end-to-end would save these
    # transpose passes.)
    out = out[..., :c_out].reshape(n, h, wp, c_out)[:, :, :w, :]
    return jnp.transpose(out, (0, 3, 1, 2))


# ----------------------------------------------------------------------------
# Parameters (Conv2d + eval-mode BatchNorm2d) and pure-JAX reference
# ----------------------------------------------------------------------------
def conv_bn_params(key, c_in, c_out):
    kw_, kb_ = jax.random.split(key)
    wt = jax.random.normal(kw_, (c_out, c_in, 3, 3), jnp.float32) * (2.0 / (c_in * 9)) ** 0.5
    b = 0.01 * jax.random.normal(kb_, (c_out,), jnp.float32)
    # TODO(synk): training-mode BatchNorm2d (batch statistics) not implemented;
    # eval-mode running stats (PyTorch defaults) are folded into scale/bias.
    gamma = jnp.ones((c_out,), jnp.float32)
    beta = jnp.zeros((c_out,), jnp.float32)
    r_mean = jnp.zeros((c_out,), jnp.float32)
    r_var = jnp.ones((c_out,), jnp.float32)
    scale = gamma * jax.lax.rsqrt(r_var + BN_EPS)
    bias = (b - r_mean) * scale + beta
    w9 = jnp.transpose(wt, (2, 3, 1, 0)).reshape(9, c_in, c_out)   # k = kh*3 + kw
    return w9, scale.reshape(1, c_out), bias.reshape(1, c_out)


def _ref_stage(x, w9, s, b):
    c_in, c_out = w9.shape[1], w9.shape[2]
    # Same BN-fold + COMPUTE_DTYPE weight rounding as the kernel, so this check
    # isolates kernel correctness from the (documented) bf16 accuracy knob.
    wf = (w9 * s.reshape(1, 1, c_out)).astype(COMPUTE_DTYPE).astype(jnp.float32)
    wt = jnp.transpose(wf.reshape(3, 3, c_in, c_out), (3, 2, 0, 1))
    y = jax.lax.conv_general_dilated(
        x, wt, window_strides=(1, 1), padding=((1, 1), (1, 1)),
        dimension_numbers=("NCHW", "OIHW", "NCHW"))
    return jnp.maximum(y + b.reshape(1, -1, 1, 1), 0.0)


def double_conv_ref(x, w1, s1, b1, w2, s2, b2):
    return _ref_stage(_ref_stage(x, w1, s1, b1), w2, s2, b2)


if __name__ == "__main__":
    key = jax.random.PRNGKey(0)
    k1, k2, kx = jax.random.split(key, 3)
    N, C_IN, C_OUT, H, W = 2, 4, 32, 16, 16

    w1, s1, b1 = conv_bn_params(k1, C_IN, C_OUT)
    w2, s2, b2 = conv_bn_params(k2, C_OUT, C_OUT)
    x = jax.random.normal(kx, (N, C_IN, H, W), jnp.float32)

    y = double_conv(x, w1, s1, b1, w2, s2, b2)
    jax.block_until_ready(y)
    assert y.shape == (N, C_OUT, H, W)
    assert bool(jnp.all(jnp.isfinite(y)))
    assert bool(jnp.all(y >= 0.0))               # ReLU output

    y_ref = double_conv_ref(x, w1, s1, b1, w2, s2, b2)
    err = float(jnp.max(jnp.abs(y - y_ref)))
    assert err < 1e-1, f"max abs err vs reference: {err}"
    print("KERNEL_OK")
</pallas_src>

<mosaic_0001>
module attributes {stable_mosaic.version = 11 : i64} {
  func.func @_double_conv_kernel(%arg0: i32, %arg1: i32, %arg2: memref<1x288x36xbf16, #tpu.memory_space<vmem>>, %arg3: memref<288x1xf32, #tpu.memory_space<vmem>>, %arg4: memref<1x36x128xbf16, #tpu.memory_space<vmem>>, %arg5: memref<1x128xf32, #tpu.memory_space<vmem>>, %arg6: memref<9x128x128xbf16, #tpu.memory_space<vmem>>, %arg7: memref<1x128xf32, #tpu.memory_space<vmem>>, %arg8: memref<1x288x128xf32, #tpu.memory_space<vmem>>, %arg9: memref<352x128xbf16, #tpu.memory_space<vmem>>) attributes {dimension_semantics = [#tpu.dimension_semantics<parallel>, #tpu.dimension_semantics<arbitrary>], iteration_bounds = array<i64: 2, 1>, scalar_prefetch = 0 : i64, scratch_operands = 1 : i64, tpu.core_type = #tpu.core_type<tc>, window_params = [{transform_indices = @transform_0, window_bounds = array<i64: 1, 288, 36>}, {pipeline_mode = #tpu.pipeline_mode<synchronous>, transform_indices = @transform_1, window_bounds = array<i64: 288, 1>}, {pipeline_mode = #tpu.pipeline_mode<synchronous>, transform_indices = @transform_2, window_bounds = array<i64: 1, 36, 128>}, {pipeline_mode = #tpu.pipeline_mode<synchronous>, transform_indices = @transform_3, window_bounds = array<i64: 1, 128>}, {transform_indices = @transform_4, window_bounds = array<i64: 9, 128, 128>}, {transform_indices = @transform_5, window_bounds = array<i64: 1, 128>}, {transform_indices = @transform_6, window_bounds = array<i64: 1, 288, 128>}]} {
    %c0_i32 = arith.constant 0 : i32
    %0 = arith.cmpi eq, %arg1, %c0_i32 : i32
    %1 = arith.extui %0 : i1 to i32
    %c0_i32_0 = arith.constant 0 : i32
    %2 = arith.cmpi ne, %1, %c0_i32_0 : i32
    scf.if %2 {
      %cst_43 = arith.constant 0.000000e+00 : f32
      %57 = vector.broadcast %cst_43 : f32 to vector<288x128xf32>
      %c0_44 = arith.constant 0 : index
      %c0_45 = arith.constant 0 : index
      %c0_46 = arith.constant 0 : index
      %58 = vector.load %arg2[%c0_44, %c0_45, %c0_46] : memref<1x288x36xbf16, #tpu.memory_space<vmem>>, vector<1x288x36xbf16>
      %59 = vector.shape_cast %58 : vector<1x288x36xbf16> to vector<288x36xbf16>
      %c0_47 = arith.constant 0 : index
      %c0_48 = arith.constant 0 : index
      %c0_49 = arith.constant 0 : index
      %60 = vector.load %arg4[%c0_47, %c0_48, %c0_49] : memref<1x36x128xbf16, #tpu.memory_space<vmem>>, vector<1x36x128xbf16>
      %61 = vector.shape_cast %60 : vector<1x36x128xbf16> to vector<36x128xbf16>
      %cst_50 = arith.constant dense<0.000000e+00> : vector<288x128xf32>
      %62 = tpu.matmul %59, %61, %cst_50 {dimension_numbers = #tpu.dot_dimension_numbers<[1], [0], [0], [1], [0, 0, 1, 1], [], []>} : vector<288x36xbf16>, vector<36x128xbf16>, vector<288x128xf32> -> vector<288x128xf32>
      %63 = arith.addf %57, %62 : vector<288x128xf32>
      %c0_51 = arith.constant 0 : index
      %c0_52 = arith.constant 0 : index
      %64 = vector.load %arg5[%c0_51, %c0_52] : memref<1x128xf32, #tpu.memory_space<vmem>>, vector<1x128xf32>
      %65 = vector.broadcast %64 : vector<1x128xf32> to vector<288x128xf32>
      %66 = arith.addf %63, %65 : vector<288x128xf32>
      %cst_53 = arith.constant 0.000000e+00 : f32
      %67 = vector.broadcast %cst_53 : f32 to vector<288x128xf32>
      %68 = arith.maximumf %66, %67 : vector<288x128xf32>
      %c0_54 = arith.constant 0 : index
      %c0_55 = arith.constant 0 : index
      %69 = vector.load %arg3[%c0_54, %c0_55] : memref<288x1xf32, #tpu.memory_space<vmem>>, vector<288x1xf32>
      %70 = vector.broadcast %69 : vector<288x1xf32> to vector<288x128xf32>
      %71 = arith.mulf %68, %70 : vector<288x128xf32>
      %cst_56 = arith.constant 0.000000e+00 : bf16
      %72 = vector.broadcast %cst_56 : bf16 to vector<32x128xbf16>
      %c0_57 = arith.constant 0 : index
      %c0_58 = arith.constant 0 : index
      %73 = vector.load %arg9[%c0_57, %c0_58] : memref<352x128xbf16, #tpu.memory_space<vmem>>, vector<32x128xbf16>
      tpu.vector_store %arg9[%c0_57, %c0_58], %72 {strides = array<i32>} : memref<352x128xbf16, #tpu.memory_space<vmem>>, vector<32x128xbf16>,
      %cst_59 = arith.constant 0.000000e+00 : bf16
      %74 = vector.broadcast %cst_59 : bf16 to vector<32x128xbf16>
      %c320 = arith.constant 320 : index
      %c0_60 = arith.constant 0 : index
      %75 = vector.load %arg9[%c320, %c0_60] : memref<352x128xbf16, #tpu.memory_space<vmem>>, vector<32x128xbf16>
      tpu.vector_store %arg9[%c320, %c0_60], %74 {strides = array<i32>} : memref<352x128xbf16, #tpu.memory_space<vmem>>, vector<32x128xbf16>,
      %76 = arith.truncf %71 : vector<288x128xf32> to vector<288x128xbf16>
      %c32_61 = arith.constant 32 : index
      %c0_62 = arith.constant 0 : index
      %77 = vector.load %arg9[%c32_61, %c0_62] : memref<352x128xbf16, #tpu.memory_space<vmem>>, vector<288x128xbf16>
      tpu.vector_store %arg9[%c32_61, %c0_62], %76 {strides = array<i32>} : memref<352x128xbf16, #tpu.memory_space<vmem>>, vector<288x128xbf16>,
    } else {
    }
    %cst = arith.constant 0.000000e+00 : f32
    %3 = vector.broadcast %cst : f32 to vector<288x128xf32>
    %c13 = arith.constant 13 : index
    %c0 = arith.constant 0 : index
    %4 = vector.load %arg9[%c13, %c0] : memref<352x128xbf16, #tpu.memory_space<vmem>>, vector<288x128xbf16>
    %c0_1 = arith.constant 0 : index
    %c0_2 = arith.constant 0 : index
    %c0_3 = arith.constant 0 : index
    %5 = vector.load %arg6[%c0_1, %c0_2, %c0_3] : memref<9x128x128xbf16, #tpu.memory_space<vmem>>, vector<1x128x128xbf16>
    %6 = vector.shape_cast %5 : vector<1x128x128xbf16> to vector<128x128xbf16>
    %cst_4 = arith.constant dense<0.000000e+00> : vector<288x128xf32>
    %7 = tpu.matmul %4, %6, %cst_4 {dimension_numbers = #tpu.dot_dimension_numbers<[1], [0], [0], [1], [0, 0, 1, 1], [], []>} : vector<288x128xbf16>, vector<128x128xbf16>, vector<288x128xf32> -> vector<288x128xf32>
    %8 = arith.addf %3, %7 : vector<288x128xf32>
    %c14 = arith.constant 14 : index
    %c0_5 = arith.constant 0 : index
    %9 = vector.load %arg9[%c14, %c0_5] : memref<352x128xbf16, #tpu.memory_space<vmem>>, vector<288x128xbf16>
    %c1 = arith.constant 1 : index
    %c0_6 = arith.constant 0 : index
    %c0_7 = arith.constant 0 : index
    %10 = vector.load %arg6[%c1, %c0_6, %c0_7] : memref<9x128x128xbf16, #tpu.memory_space<vmem>>, vector<1x128x128xbf16>
    %11 = vector.shape_cast %10 : vector<1x128x128xbf16> to vector<128x128xbf16>
    %cst_8 = arith.constant dense<0.000000e+00> : vector<288x128xf32>
    %12 = tpu.matmul %9, %11, %cst_8 {dimension_numbers = #tpu.dot_dimension_numbers<[1], [0], [0], [1], [0, 0, 1, 1], [], []>} : vector<288x128xbf16>, vector<128x128xbf16>, vector<288x128xf32> -> vector<288x128xf32>
    %13 = arith.addf %8, %12 : vector<288x128xf32>
    %c15 = arith.constant 15 : index
    %c0_9 = arith.constant 0 : index
    %14 = vector.load %arg9[%c15, %c0_9] : memref<352x128xbf16, #tpu.memory_space<vmem>>, vector<288x128xbf16>
    %c2 = arith.constant 2 : index
    %c0_10 = arith.constant 0 : index
    %c0_11 = arith.constant 0 : index
    %15 = vector.load %arg6[%c2, %c0_10, %c0_11] : memref<9x128x128xbf16, #tpu.memory_space<vmem>>, vector<1x128x128xbf16>
    %16 = vector.shape_cast %15 : vector<1x128x128xbf16> to vector<128x128xbf16>
    %cst_12 = arith.constant dense<0.000000e+00> : vector<288x128xf32>
    %17 = tpu.matmul %14, %16, %cst_12 {dimension_numbers = #tpu.dot_dimension_numbers<[1], [0], [0], [1], [0, 0, 1, 1], [], []>} : vector<288x128xbf16>, vector<128x128xbf16>, vector<288x128xf32> -> vector<288x128xf32>
    %18 = arith.addf %13, %17 : vector<288x128xf32>
    %c31 = arith.constant 31 : index
    %c0_13 = arith.constant 0 : index
    %19 = vector.load %arg9[%c31, %c0_13] : memref<352x128xbf16, #tpu.memory_space<vmem>>, vector<288x128xbf16>
    %c3 = arith.constant 3 : index
    %c0_14 = arith.constant 0 : index
    %c0_15 = arith.constant 0 : index
    %20 = vector.load %arg6[%c3, %c0_14, %c0_15] : memref<9x128x128xbf16, #tpu.memory_space<vmem>>, vector<1x128x128xbf16>
    %21 = vector.shape_cast %20 : vector<1x128x128xbf16> to vector<128x128xbf16>
    %cst_16 = arith.constant dense<0.000000e+00> : vector<288x128xf32>
    %22 = tpu.matmul %19, %21, %cst_16 {dimension_numbers = #tpu.dot_dimension_numbers<[1], [0], [0], [1], [0, 0, 1, 1], [], []>} : vector<288x128xbf16>, vector<128x128xbf16>, vector<288x128xf32> -> vector<288x128xf32>
    %23 = arith.addf %18, %22 : vector<288x128xf32>
    %c32 = arith.constant 32 : index
    %c0_17 = arith.constant 0 : index
    %24 = vector.load %arg9[%c32, %c0_17] : memref<352x128xbf16, #tpu.memory_space<vmem>>, vector<288x128xbf16>
    %c4 = arith.constant 4 : index
    %c0_18 = arith.constant 0 : index
    %c0_19 = arith.constant 0 : index
    %25 = vector.load %arg6[%c4, %c0_18, %c0_19] : memref<9x128x128xbf16, #tpu.memory_space<vmem>>, vector<1x128x128xbf16>
    %26 = vector.shape_cast %25 : vector<1x128x128xbf16> to vector<128x128xbf16>
    %cst_20 = arith.constant dense<0.000000e+00> : vector<288x128xf32>
    %27 = tpu.matmul %24, %26, %cst_20 {dimension_numbers = #tpu.dot_dimension_numbers<[1], [0], [0], [1], [0, 0, 1, 1], [], []>} : vector<288x128xbf16>, vector<128x128xbf16>, vector<288x128xf32> -> vector<288x128xf32>
    %28 = arith.addf %23, %27 : vector<288x128xf32>
    %c33 = arith.constant 33 : index
    %c0_21 = arith.constant 0 : index
    %29 = vector.load %arg9[%c33, %c0_21] : memref<352x128xbf16, #tpu.memory_space<vmem>>, vector<288x128xbf16>
    %c5 = arith.constant 5 : index
    %c0_22 = arith.constant 0 : index
    %c0_23 = arith.constant 0 : index
    %30 = vector.load %arg6[%c5, %c0_22, %c0_23] : memref<9x128x128xbf16, #tpu.memory_space<vmem>>, vector<1x128x128xbf16>
    %31 = vector.shape_cast %30 : vector<1x128x128xbf16> to vector<128x128xbf16>
    %cst_24 = arith.constant dense<0.000000e+00> : vector<288x128xf32>
    %32 = tpu.matmul %29, %31, %cst_24 {dimension_numbers = #tpu.dot_dimension_numbers<[1], [0], [0], [1], [0, 0, 1, 1], [], []>} : vector<288x128xbf16>, vector<128x128xbf16>, vector<288x128xf32> -> vector<288x128xf32>
    %33 = arith.addf %28, %32 : vector<288x128xf32>
    %c49 = arith.constant 49 : index
    %c0_25 = arith.constant 0 : index
    %34 = vector.load %arg9[%c49, %c0_25] : memref<352x128xbf16, #tpu.memory_space<vmem>>, vector<288x128xbf16>
    %c6 = arith.constant 6 : index
    %c0_26 = arith.constant 0 : index
    %c0_27 = arith.constant 0 : index
    %35 = vector.load %arg6[%c6, %c0_26, %c0_27] : memref<9x128x128xbf16, #tpu.memory_space<vmem>>, vector<1x128x128xbf16>
    %36 = vector.shape_cast %35 : vector<1x128x128xbf16> to vector<128x128xbf16>
    %cst_28 = arith.constant dense<0.000000e+00> : vector<288x128xf32>
    %37 = tpu.matmul %34, %36, %cst_28 {dimension_numbers = #tpu.dot_dimension_numbers<[1], [0], [0], [1], [0, 0, 1, 1], [], []>} : vector<288x128xbf16>, vector<128x128xbf16>, vector<288x128xf32> -> vector<288x128xf32>
    %38 = arith.addf %33, %37 : vector<288x128xf32>
    %c50 = arith.constant 50 : index
    %c0_29 = arith.constant 0 : index
    %39 = vector.load %arg9[%c50, %c0_29] : memref<352x128xbf16, #tpu.memory_space<vmem>>, vector<288x128xbf16>
    %c7 = arith.constant 7 : index
    %c0_30 = arith.constant 0 : index
    %c0_31 = arith.constant 0 : index
    %40 = vector.load %arg6[%c7, %c0_30, %c0_31] : memref<9x128x128xbf16, #tpu.memory_space<vmem>>, vector<1x128x128xbf16>
    %41 = vector.shape_cast %40 : vector<1x128x128xbf16> to vector<128x128xbf16>
    %cst_32 = arith.constant dense<0.000000e+00> : vector<288x128xf32>
    %42 = tpu.matmul %39, %41, %cst_32 {dimension_numbers = #tpu.dot_dimension_numbers<[1], [0], [0], [1], [0, 0, 1, 1], [], []>} : vector<288x128xbf16>, vector<128x128xbf16>, vector<288x128xf32> -> vector<288x128xf32>
    %43 = arith.addf %38, %42 : vector<288x128xf32>
    %c51 = arith.constant 51 : index
    %c0_33 = arith.constant 0 : index
    %44 = vector.load %arg9[%c51, %c0_33] : memref<352x128xbf16, #tpu.memory_space<vmem>>, vector<288x128xbf16>
    %c8 = arith.constant 8 : index
    %c0_34 = arith.constant 0 : index
    %c0_35 = arith.constant 0 : index
    %45 = vector.load %arg6[%c8, %c0_34, %c0_35] : memref<9x128x128xbf16, #tpu.memory_space<vmem>>, vector<1x128x128xbf16>
    %46 = vector.shape_cast %45 : vector<1x128x128xbf16> to vector<128x128xbf16>
    %cst_36 = arith.constant dense<0.000000e+00> : vector<288x128xf32>
    %47 = tpu.matmul %44, %46, %cst_36 {dimension_numbers = #tpu.dot_dimension_numbers<[1], [0], [0], [1], [0, 0, 1, 1], [], []>} : vector<288x128xbf16>, vector<128x128xbf16>, vector<288x128xf32> -> vector<288x128xf32>
    %48 = arith.addf %43, %47 : vector<288x128xf32>
    %c0_37 = arith.constant 0 : index
    %c0_38 = arith.constant 0 : index
    %49 = vector.load %arg7[%c0_37, %c0_38] : memref<1x128xf32, #tpu.memory_space<vmem>>, vector<1x128xf32>
    %50 = vector.broadcast %49 : vector<1x128xf32> to vector<288x128xf32>
    %51 = arith.addf %48, %50 : vector<288x128xf32>
    %cst_39 = arith.constant 0.000000e+00 : f32
    %52 = vector.broadcast %cst_39 : f32 to vector<288x128xf32>
    %53 = arith.maximumf %51, %52 : vector<288x128xf32>
    %c0_40 = arith.constant 0 : index
    %c0_41 = arith.constant 0 : index
    %c0_42 = arith.constant 0 : index
    %54 = vector.load %arg8[%c0_40, %c0_41, %c0_42] : memref<1x288x128xf32, #tpu.memory_space<vmem>>, vector<1x288x128xf32>
    %55 = vector.shape_cast %54 : vector<1x288x128xf32> to vector<288x128xf32>
    %56 = vector.shape_cast %53 : vector<288x128xf32> to vector<1x288x128xf32>
    tpu.vector_store %arg8[%c0_40, %c0_41, %c0_42], %56 {strides = array<i32>} : memref<1x288x128xf32, #tpu.memory_space<vmem>>, vector<1x288x128xf32>,
    return
  }
  func.func @transform_0(%arg0: i32, %arg1: i32) -> (i32, i32, i32) {
    %c0_i32 = arith.constant 0 : i32
    %c0_i32_0 = arith.constant 0 : i32
    %c0_i32_1 = arith.constant 0 : i32
    return %arg0, %c0_i32, %c0_i32_0 : i32, i32, i32
  }
  func.func @transform_1(%arg0: i32, %arg1: i32) -> (i32, i32) {
    %c0_i32 = arith.constant 0 : i32
    %c0_i32_0 = arith.constant 0 : i32
    %c0_i32_1 = arith.constant 0 : i32
    return %c0_i32, %c0_i32_0 : i32, i32
  }
  func.func @transform_2(%arg0: i32, %arg1: i32) -> (i32, i32, i32) {
    %c0_i32 = arith.constant 0 : i32
    %c0_i32_0 = arith.constant 0 : i32
    %c0_i32_1 = arith.constant 0 : i32
    %c0_i32_2 = arith.constant 0 : i32
    return %c0_i32, %c0_i32_0, %c0_i32_1 : i32, i32, i32
  }
  func.func @transform_3(%arg0: i32, %arg1: i32) -> (i32, i32) {
    %c0_i32 = arith.constant 0 : i32
    %c0_i32_0 = arith.constant 0 : i32
    %c0_i32_1 = arith.constant 0 : i32
    return %c0_i32, %c0_i32_0 : i32, i32
  }
  func.func @transform_4(%arg0: i32, %arg1: i32) -> (i32, i32, i32) {
    %c0_i32 = arith.constant 0 : i32
    %c0_i32_0 = arith.constant 0 : i32
    %c0_i32_1 = arith.constant 0 : i32
    return %c0_i32, %c0_i32_0, %arg1 : i32, i32, i32
  }
  func.func @transform_5(%arg0: i32, %arg1: i32) -> (i32, i32) {
    %c0_i32 = arith.constant 0 : i32
    %c0_i32_0 = arith.constant 0 : i32
    return %c0_i32, %arg1 : i32, i32
  }
  func.func @transform_6(%arg0: i32, %arg1: i32) -> (i32, i32, i32) {
    %c0_i32 = arith.constant 0 : i32
    %c0_i32_0 = arith.constant 0 : i32
    return %arg0, %c0_i32, %arg1 : i32, i32, i32
  }
}

</mosaic_0001>

<bundles_post_ra>
// kernel: double_conv.1
= control target key start
LH: loop header
LB: loop body
LE: loop exit
PB: predicated region body
PF: predicated region fallthrough
CT: control target
= control target key end

     0   :  { %s6293_s21 = smov 0   ;;  %s6295_s22 = smov 0   ;;  %s8097_s0 = inlined_call_operand.vmem [shape: bf16[2,288,36], index: 0, kind: input, shape index: {}]   ;;  %s8098_s1 = inlined_call_operand.vmem [shape: f32[288,1], index: 1, kind: input, shape index: {}]   ;;  %s8099_s2 = inlined_call_operand.vmem [shape: bf16[1,36,128], index: 2, kind: input, shape index: {}]   ;;  %s8100_s3 = inlined_call_operand.vmem [shape: f32[1,128], index: 3, kind: input, shape index: {}]   ;;  %s8101_s4 = inlined_call_operand.vmem [shape: bf16[9,128,128], index: 4, kind: input, shape index: {}]   ;;  %s8102_s5 = inlined_call_operand.vmem [shape: f32[1,128], index: 5, kind: input, shape index: {}]   ;;  %s8103_s6 = inlined_call_operand.vmem [shape: f32[2,288,128], index: 6, kind: output, shape index: {}]  }
   0x1   :  { %s6297_s23 = smov 0  }
   0x2 LB: > { %s28_s24 = sadd.s32 1, %s6251_s22  ;;  %p4784_p0 = scmp.ge.s32.totalorder %s6255_s23, 1  ;;  %s6255_s23 = sphi %s6297_s23, %s16_s23   ;;  %s6251_s22 = sphi %s6295_s22, %s8315_s22   ;;  %s6247_s21 = sphi %s6293_s21, %s8314_s21  }
   0x3   : > { %p30_p1 = scmp.ge.s32.totalorder %s28_s24, 2  ;;  %p243_p2 = scmp.lt.s32.totalorder %s6255_s23, 3 }
   0x5   : > { %s8317_s24 = smov (%p30_p1, %s28_s24), 0  ;;  %p244_p3 = pnand %p4784_p0, %p243_p2 }
   0x7   : > { %247 = sbr.rel (%p244_p3) target bundleno = 830 (0x33e), region = 44 }
   0xe   : > { %v6129_v0 = vld [vmem:[%s8099_s2] sm:$0xff]   ;;  %v6130_v1 = vld [vmem:[%s8099_s2 + $0x8] sm:$0xff]   ;;  %p283_p4 = scmp.lt.s32.totalorder %s6247_s21, 1  ;;  %v739_v3 = vld [vmem:[%s8098_s1 + $0x30] sm:$0xff]  ;;  %v6257_v5 = vmov 0   ;;  %vm516_vm0 = vcmask 1041408  }
   0xf   : > { %5285 = vmatprep.subr.bf16.mxu0 %v6129_v0  ;;  %v737_v2 = vld [vmem:[%s8098_s1 + $0x20] sm:$0xff]  ;;  %v6131_v4 = vld [vmem:[%s8099_s2 + $0x10] ss:$0 sps:$4 sm:$0x33]   ;;  %6127 = vset.pattern.permute.xlu0 %v6257_v5  ;;  %985 = vst [vmem:[#allocation2] sm:$0xff] %v6257_v5  ;;  %986 = vst [vmem:[#allocation2 + $0x8] sm:$0xff] %v6257_v5 }
  0x10   : > { %5286 = vmatpush3.bf16.msra.mxu0 %v6129_v0  ;;  %s8319_s21 = smov (!%p283_p4, %s6247_s21), 1  ;;  %987 = vst [vmem:[#allocation2 + $0xa0] sm:$0xff] %v6257_v5  ;;  %988 = vst [vmem:[#allocation2 + $0xa8] sm:$0xff] %v6257_v5  ;;  %6128 = vset.pattern.permute.xlu1 %v6257_v5  ;;  %v738_v6 = vld [vmem:[%s8098_s1 + $0x28] sm:$0xff]  ;;  %vm461_vm1 = vcmask 293888   ;;  %v740_v7 = vld [vmem:[%s8098_s1 + $0x38] sm:$0xff] }
  0x11   : > { %5287 = vmatprep.subr.bf16.mxu0 %v6130_v1  ;;  %s6100_s11 = smul.u32 144, %s8319_s21  ;;  %791 = vperm.xlu0 %6127, %v737_v2   ;;  %v518_v8 = vsel %vm516_vm0, %v6131_v4, 0  ;;  %v741_v10 = vld [vmem:[%s8098_s1 + $0x40] sm:$0xff]  ;;  %v742_v11 = vld [vmem:[%s8098_s1 + $0x48] sm:$0xff]  ;;  %v743_v14 = vld [vmem:[%s8098_s1 + $0x50] sm:$0xff]  ;;  %vm1097_vm2 = vcmask 1040384  }
  0x12   : > { %801 = vperm.xlu1 %6128, %v739_v3   ;;  %v744_v15 = vld [vmem:[%s8098_s1 + $0x58] sm:$0xff]  ;;  %v745_v16 = vld [vmem:[%s8098_s1 + $0x60] sm:$0xff]  ;;  %v746_v17 = vld [vmem:[%s8098_s1 + $0x68] sm:$0xff]  ;;  %vm2930_vm3 = vsmask.f32 7424  ;;  %vm3858_vm6 = vcmask 1046528  }
  0x13   : > { %s6341_s16 = scalar_lea.vmem %s8097_s0, %s6100_s11  ;;  %v747_v20 = vld [vmem:[%s8098_s1 + $0x70] sm:$0xff]  ;;  %v748_v21 = vld [vmem:[%s8098_s1 + $0x78] sm:$0xff]  ;;  %v749_v22 = vld [vmem:[%s8098_s1 + $0x80] sm:$0xff]  ;;  %vm1378_vm4 = vsmask.f32 1280  ;;  %s6101_s8 = smul.u32 288, %s8319_s21 }
  0x14   : > { %5288 = vmatpush3.bf16.msra.mxu0 %v6130_v1  ;;  %v6132_v9 = vld [vmem:[%s6341_s16] sm:$0xff]   ;;  %v6133_v12 = vld [vmem:[%s6341_s16 + $0x8] sm:$0xff]   ;;  %v6134_v13 = vld [vmem:[%s6341_s16 + $0x10] sm:$0xff]   ;;  %vm1810_vm5 = vsmask.f32 256 }
  0x15   : > { %6099 = vmatprep.subr.msk.bf16.mxu0 %vm516_vm0, %v6131_v4  ;;  %796 = vperm.xlu0 %6127, %v738_v6   ;;  %v6135_v18 = vld [vmem:[%s6341_s16 + $0x18] sm:$0xff]   ;;  %v6136_v19 = vld [vmem:[%s6341_s16 + $0x20] sm:$0xff]   ;;  %v6137_v23 = vld [vmem:[%s6341_s16 + $0x28] sm:$0xff]   ;;  %vm4193_vm7 = vsmask.f32 6400  ;;  %s7987_s21 = scalar_lea.vmem %s8103_s6, %s6101_s8 }
  0x16   : > { %5291 = vmatprep.mubr.msk.bf16.mxu0 %vm461_vm1, %v6132_v9  ;;  %806 = vperm.xlu1 %6128, %v740_v7   ;;  %v6138_v24 = vld [vmem:[%s6341_s16 + $0x30] sm:$0xff]   ;;  %v750_v25 = vld [vmem:[%s8098_s1 + $0x88] sm:$0xff]  ;;  %v752_v27 = vld [vmem:[%s8098_s1 + $0x98] sm:$0xff] }
  0x17   : > { %v751_v26 = vld [vmem:[%s8098_s1 + $0x90] sm:$0xff]  ;;  %v6139_v28 = vld [vmem:[%s6341_s16 + $0x38] sm:$0xff]   ;;  %v753_v29 = vld [vmem:[%s8098_s1 + $0xa0] sm:$0xff] }
  0x18   : > { %5290 = vmatpush3.bf16.msra.mxu0 %v518_v8  ;;  %v6140_v30 = vld [vmem:[%s6341_s16 + $0x40] sm:$0xff]   ;;  %v754_v31 = vld [vmem:[%s8098_s1 + $0xa8] sm:$0xff]  ;;  %v755_v32 = vld [vmem:[%s8098_s1 + $0xb0] sm:$0xff] }
  0x19   : > { %811 = vperm.xlu0 %6127, %v741_v10   ;;  %v756_v33 = vld [vmem:[%s8098_s1 + $0xb8] sm:$0xff]  ;;  %v6141_v34 = vld [vmem:[%s6341_s16 + $0x48] sm:$0xff]   ;;  %v757_v35 = vld [vmem:[%s8098_s1 + $0xc0] sm:$0xff] }
  0x1a   : > { %816 = vperm.xlu1 %6128, %v742_v11   ;;  %v6142_v36 = vld [vmem:[%s6341_s16 + $0x50] sm:$0xff]   ;;  %v758_v37 = vld [vmem:[%s8098_s1 + $0xc8] sm:$0xff]  ;;  %v760_v39 = vld [vmem:[%s8098_s1 + $0xd8] sm:$0xff] }
  0x1b   : > { %5292 = vmatmul.mubr.msk.bf16.vlgmr.msra.gmra.mrb[0].mxu0 %vm461_vm1, %v6133_v12  ;;  %v759_v38 = vld [vmem:[%s8098_s1 + $0xd0] sm:$0xff]  ;;  %v6143_v40 = vld [vmem:[%s6341_s16 + $0x58] sm:$0xff]   ;;  %v761_v41 = vld [vmem:[%s8098_s1 + $0xe0] sm:$0xff] }
  0x1c   : > { %5295 = vmatprep.mubr.msk.bf16.mxu0 %vm461_vm1, %v6134_v13  ;;  %v6144_v42 = vld [vmem:[%s6341_s16 + $0x60] sm:$0xff]   ;;  %v762_v43 = vld [vmem:[%s8098_s1 + $0xe8] sm:$0xff]  ;;  %v763_v44 = vld [vmem:[%s8098_s1 + $0xf0] sm:$0xff]  ;;  %v6524_v13 = vrot.slane %v6257_v5, 7 }
  0x1d   : > { %821 = vperm.xlu0 %6127, %v743_v14   ;;  %v764_v45 = vld [vmem:[%s8098_s1 + $0xf8] sm:$0xff]  ;;  %v6145_v46 = vld [vmem:[%s6341_s16 + $0x68] sm:$0xff]   ;;  %v733_v47 = vld [vmem:[%s8098_s1] sm:$0xff] }
  0x1e   : > { %826 = vperm.xlu1 %6128, %v744_v15   ;;  %v6146_v48 = vld [vmem:[%s6341_s16 + $0x70] sm:$0xff]   ;;  %v734_v49 = vld [vmem:[%s8098_s1 + $0x8] sm:$0xff]  ;;  %v6150_v50 = vld [vmem:[%s8101_s4 + $0x40] sm:$0xff]  }
  0x1f   : > { %5327 = vmatprep.subr.bf16.mxu0 %v6150_v50  ;;  %v765_v51 = vld [vmem:[%s8098_s1 + $0x100] sm:$0xff]  ;;  %v766_v52 = vld [vmem:[%s8098_s1 + $0x108] sm:$0xff]  ;;  %v6147_v55 = vld [vmem:[%s6341_s16 + $0x78] sm:$0xff]  }
  0x20   : > { %5328 = vmatpush3.bf16.msra.mxu0 %v6150_v50  ;;  %v6151_v53 = vld [vmem:[%s8101_s4 + $0x48] sm:$0xff]   ;;  %v6152_v54 = vld [vmem:[%s8101_s4 + $0x100] sm:$0xff]   ;;  %v767_v56 = vld [vmem:[%s8098_s1 + $0x110] sm:$0xff] }
  0x21   : > { %831 = vperm.xlu0 %6127, %v745_v16   ;;  %5329 = vmatprep.subr.bf16.mxu0 %v6151_v53  ;;  %v6148_v57 = vld [vmem:[%s6341_s16 + $0x80] sm:$0xff]   ;;  %v768_v58 = vld [vmem:[%s8098_s1 + $0x118] sm:$0xff]  ;;  %v6153_v59 = vld [vmem:[%s8101_s4 + $0x50] sm:$0xff]  }
  0x22   : > { %836 = vperm.xlu1 %6128, %v746_v17   ;;  %5795 = vmatprep.subr.bf16.mxu1 %v6152_v54  ;;  %v6154_v60 = vld [vmem:[%s8101_s4 + $0x108] sm:$0xff]   ;;  %v735_v61 = vld [vmem:[%s8098_s1 + $0x10] sm:$0xff]  ;;  %v736_v62 = vld [vmem:[%s8098_s1 + $0x18] sm:$0xff] }
  0x23   : > { %5296 = vmatmul.mubr.msk.bf16.gmra.mrb[4].mxu0 %vm461_vm1, %v6135_v18  ;;  %5803 = vmatpush3.bf16.msra.mxu1 %v6152_v54  ;;  %v6149_v63 = vld [vmem:[%s6341_s16 + $0x88] sm:$0xff]   ;;  %v6155_v0 = vld [vmem:[%s8101_s4 + $0x58] sm:$0xff]   ;;  %v6156_v1 = vld [vmem:[%s8101_s4 + $0x110] sm:$0xff]  }
  0x24   : > { %5299 = vmatprep.mubr.msk.bf16.mxu0 %vm461_vm1, %v6136_v19  ;;  %5330 = vmatpush3.bf16.msra.mxu0 %v6151_v53  ;;  %v6157_v2 = vld [vmem:[%s8101_s4 + $0x60] sm:$0xff]   ;;  %v6158_v3 = vld [vmem:[%s8101_s4 + $0x118] sm:$0xff]   ;;  %v6159_v4 = vld [vmem:[%s8101_s4 + $0x68] sm:$0xff]  }
  0x25   : > { %841 = vperm.xlu0 %6127, %v747_v20   ;;  %5331 = vmatprep.subr.bf16.mxu0 %v6153_v59  ;;  %v6160_v6 = vld [vmem:[%s8101_s4 + $0x120] sm:$0xff]   ;;  %v6161_v7 = vld [vmem:[%s8101_s4 + $0x70] sm:$0xff]   ;;  %v6162_v8 = vld [vmem:[%s8101_s4 + $0x128] sm:$0xff]  }
  0x26   : > { %846 = vperm.xlu1 %6128, %v748_v21   ;;  %5796 = vmatprep.subr.bf16.mxu1 %v6154_v60  ;;  %v6163_v9 = vld [vmem:[%s8101_s4 + $0x78] sm:$0xff]   ;;  %v1060_v10 = vld [vmem:[#allocation2] sm:$0x80]  ;;  %v6164_v11 = vld [vmem:[%s8101_s4 + $0x130] sm:$0xff]  }
  0x27   : > { %5804 = vmatpush3.bf16.msra.mxu1 %v6154_v60  ;;  %v1098_v12 = vrot.slane %v1060_v10, 7  ;;  %v6165_v15 = vld [vmem:[%s8101_s4 + $0x138] sm:$0xff]   ;;  %v6538_v5 = vld [vmem:[%s8101_s4 + $0x140] sm:$0xff]  }
  0x28   : > { %5332 = vmatpush3.bf16.msra.mxu0 %v6153_v59  ;;  %5797 = vmatprep.subr.bf16.mxu1 %v6156_v1  ;;  %v6608_v50 = vld [vmem:[%s8100_s3] ss:$0 sm:$0xff] }
  0x29   : > { %851 = vperm.xlu0 %6127, %v749_v22   ;;  %5333 = vmatprep.subr.bf16.mxu0 %v6155_v0  ;;  %v1100_v14 = vsel %vm1097_vm2, %v1098_v12, %v6524_v13 }
  0x2a   : > { %856 = vperm.xlu1 %6128, %v750_v25  }
  0x2b   : > { %5300 = vmatmul.mubr.msk.bf16.gmra.mrb[8].mxu0 %vm461_vm1, %v6137_v23  ;;  %5805 = vmatpush3.bf16.msra.mxu1 %v6156_v1 }
  0x2c   : > { %5303 = vmatprep.mubr.msk.bf16.mxu0 %vm461_vm1, %v6138_v24  ;;  %5334 = vmatpush3.bf16.msra.mxu0 %v6155_v0 }
  0x2d   : > { %861 = vperm.xlu0 %6127, %v751_v26   ;;  %5335 = vmatprep.subr.bf16.mxu0 %v6157_v2 }
  0x2e   : > { %866 = vperm.xlu1 %6128, %v752_v27   ;;  %5798 = vmatprep.subr.bf16.mxu1 %v6158_v3 }
  0x2f   : > { %5806 = vmatpush3.bf16.msra.mxu1 %v6158_v3 }
  0x30   : > { %5336 = vmatpush3.bf16.msra.mxu0 %v6157_v2  ;;  %5799 = vmatprep.subr.bf16.mxu1 %v6160_v6 }
  0x31   : > { %871 = vperm.xlu0 %6127, %v753_v29   ;;  %5337 = vmatprep.subr.bf16.mxu0 %v6159_v4 }
  0x32   : > { %876 = vperm.xlu1 %6128, %v754_v31  }
  0x33   : > { %5304 = vmatmul.mubr.msk.bf16.gmra.mrb[12].mxu0 %vm461_vm1, %v6139_v28  ;;  %5807 = vmatpush3.bf16.msra.mxu1 %v6160_v6  ;;  %v6564_v28 = vld [vmem:[%s8101_s4] sm:$0xff]  }
  0x34   : > { %5307 = vmatprep.mubr.msk.bf16.mxu0 %vm461_vm1, %v6140_v30  ;;  %5338 = vmatpush3.bf16.msra.mxu0 %v6159_v4 }
  0x35   : > { %881 = vperm.xlu0 %6127, %v755_v32   ;;  %5339 = vmatprep.subr.bf16.mxu0 %v6161_v7 }
  0x36   : > { %886 = vperm.xlu1 %6128, %v756_v33   ;;  %5800 = vmatprep.subr.bf16.mxu1 %v6162_v8 }
  0x37   : > { %5808 = vmatpush3.bf16.msra.mxu1 %v6162_v8 }
  0x38   : > { %5340 = vmatpush3.bf16.msra.mxu0 %v6161_v7  ;;  %5801 = vmatprep.subr.bf16.mxu1 %v6164_v11 }
  0x39   : > { %891 = vperm.xlu0 %6127, %v757_v35   ;;  %5341 = vmatprep.subr.bf16.mxu0 %v6163_v9 }
  0x3a   : > { %896 = vperm.xlu1 %6128, %v758_v37  }
  0x3b   : > { %5308 = vmatmul.mubr.msk.bf16.gmra.mrb[16].mxu0 %vm461_vm1, %v6141_v34  ;;  %5809 = vmatpush3.bf16.msra.mxu1 %v6164_v11 }
  0x3c   : > { %5311 = vmatprep.mubr.msk.bf16.mxu0 %vm461_vm1, %v6142_v36  ;;  %5342 = vmatpush3.bf16.msra.mxu0 %v6163_v9 }
  0x3d   : > { %901 = vperm.xlu0 %6127, %v759_v38   ;;  %5802 = vmatprep.subr.bf16.mxu1 %v6165_v15 }
  0x3e   : > { %906 = vperm.xlu1 %6128, %v760_v39   ;;  %5379 = vmatprep.subr.bf16.mxu0 %v6564_v28 }
  0x3f   : > { %5810 = vmatpush3.bf16.msra.mxu1 %v6165_v15 }
  0x40   : > { %5587 = vmatprep.subr.bf16.mxu1 %v6538_v5 }
  0x41   : > { %911 = vperm.xlu0 %6127, %v761_v41  }
  0x42   : > { %916 = vperm.xlu1 %6128, %v762_v43  }
  0x43   : > { %5312 = vmatmul.mubr.msk.bf16.gmra.mrb[20].mxu0 %vm461_vm1, %v6143_v40 }
  0x44   : > { %5315 = vmatprep.mubr.msk.bf16.mxu0 %vm461_vm1, %v6144_v42 }
  0x45   : > { %921 = vperm.xlu0 %6127, %v763_v44  }
  0x46   : > { %926 = vperm.xlu1 %6128, %v764_v45  }
  0x49   : > { %771 = vperm.xlu0 %6127, %v733_v47  }
  0x4a   : > { %776 = vperm.xlu1 %6128, %v734_v49  }
  0x4b   : > { %5316 = vmatmul.mubr.msk.bf16.gmra.mrb[24].mxu0 %vm461_vm1, %v6145_v46 }
  0x4c   : > { %5319 = vmatprep.mubr.msk.bf16.mxu0 %vm461_vm1, %v6146_v48 }
  0x4d   : > { %931 = vperm.xlu0 %6127, %v765_v51  }
  0x4e   : > { %936 = vperm.xlu1 %6128, %v766_v52  }
  0x51   : > { %941 = vperm.xlu0 %6127, %v767_v56  }
  0x52   : > { %946 = vperm.xlu1 %6128, %v768_v58  }
  0x53   : > { %5320 = vmatmul.mubr.msk.bf16.gmra.mrb[28].mxu0 %vm461_vm1, %v6147_v55 }
  0x54   : > { %5323 = vmatprep.mubr.msk.bf16.mxu0 %vm461_vm1, %v6148_v57 }
  0x55   : > { %781 = vperm.xlu0 %6127, %v735_v61  }
  0x56   : > { %786 = vperm.xlu1 %6128, %v736_v62  }
  0x5b   : > { %5324 = vmatmul.mubr.msk.bf16.gmra.mrb[32].mxu0 %vm461_vm1, %v6149_v63 }
  0x5c   : > { %5343 = vmatprep.mubr.bf16.mxu0 %v1100_v14 }
  0x90   : > { %v6531_v16 = vpop.permute.xlu0 %791 }
  0x91   : > { %v6533_v17 = vpop.permute.xlu1 %801 }
  0x94   : > { %v6541_v18 = vpop.permute.xlu0 %796 }
  0x95   : > { %v6543_v19 = vpop.permute.xlu1 %806 }
  0x98   : > { %v6545_v20 = vpop.permute.xlu0 %811 }
  0x99   : > { %v6547_v21 = vpop.permute.xlu1 %816 }
  0x9c   : > { %v6549_v22 = vpop.permute.xlu0 %821 }
  0x9d   : > { %v6551_v23 = vpop.permute.xlu1 %826 }
  0xa0   : > { %v6553_v24 = vpop.permute.xlu0 %831 }
  0xa1   : > { %v6555_v25 = vpop.permute.xlu1 %836 }
  0xa4   : > { %v6557_v26 = vpop.permute.xlu0 %841 }
  0xa5   : > { %v6559_v27 = vpop.permute.xlu1 %846 }
  0xa8   : > { %v6566_v29 = vpop.permute.xlu0 %851 }
  0xa9   : > { %v6568_v30 = vpop.permute.xlu1 %856 }
  0xac   : > { %v6571_v31 = vpop.permute.xlu0 %861 }
  0xad   : > { %v6573_v32 = vpop.permute.xlu1 %866 }
  0xb0   : > { %v6575_v33 = vpop.permute.xlu0 %871 }
  0xb1   : > { %v6577_v34 = vpop.permute.xlu1 %876 }
  0xb4   : > { %v6579_v35 = vpop.permute.xlu0 %881 }
  0xb5   : > { %v6581_v36 = vpop.permute.xlu1 %886 }
  0xb8   : > { %v6583_v37 = vpop.permute.xlu0 %891 }
  0xb9   : > { %v6585_v38 = vpop.permute.xlu1 %896 }
  0xbc   : > { %v6587_v39 = vpop.permute.xlu0 %901 }
  0xbd   : > { %v6589_v40 = vpop.permute.xlu1 %906 }
  0xc0   : > { %v6591_v41 = vpop.permute.xlu0 %911 }
  0xc1   : > { %v6593_v42 = vpop.permute.xlu1 %916 }
  0xc4   : > { %v6595_v43 = vpop.permute.xlu0 %921 }
  0xc5   : > { %v6597_v44 = vpop.permute.xlu1 %926 }
  0xc8   : > { %v772_v45 = vpop.permute.xlu0 %771 }
  0xc9   : > { %v777_v46 = vpop.permute.xlu1 %776 }
  0xcc   : > { %v6599_v47 = vpop.permute.xlu0 %931 }
  0xcd   : > { %v6601_v48 = vpop.permute.xlu1 %936 }
  0xd0   : > { %v6603_v49 = vpop.permute.xlu0 %941 }
  0xd1   : > { %v6610_v51 = vpop.permute.xlu1 %946 }
  0xd4   : > { %v782_v62 = vpop.permute.xlu0 %781 }
  0xd5   : > { %v787_v63 = vpop.permute.xlu1 %786 }
  0xee   : > { %v5293_v52 = vpop.f32.mrb[0].mxu0 }
  0xef   : > { %v563_v53 = vadd.f32 %v5293_v52, %v6608_v50  ;;  %v554_v54 = vpop.f32.mrb[1].mxu0 }
  0xf0   : > { %v555_v55 = vadd.f32 %v6608_v50, %v554_v54  ;;  %v5294_v56 = vpop.f32.mrb[2].mxu0 }
  0xf1   : > { %v699_v57 = vmax.f32 %v563_v53, 0.0  ;;  %v566_v58 = vadd.f32 %v5294_v56, %v6608_v50  ;;  %v557_v59 = vpop.f32.mrb[3].mxu0 }
  0xf2   : > { %v697_v60 = vmax.f32 %v555_v55, 0.0  ;;  %v558_v61 = vadd.f32 %v6608_v50, %v557_v59 }
  0xf3   : > { %v700_v0 = vmax.f32 %v566_v58, 0.0  ;;  %v951_v2 = vmul.f32 %v782_v62, %v699_v57  ;;  %v6172_v57 = vld [vmem:[%s8101_s4 + $0x8] sm:$0xff]  }
  0xf4   : > { %v698_v1 = vmax.f32 %v558_v61, 0.0  ;;  %v949_v4 = vmul.f32 %v772_v45, %v697_v60 }
  0xf5   : > { %v952_v3 = vmul.f32 %v787_v63, %v700_v0 }
  0xf6   : > { %v950_v6 = vmul.f32 %v777_v46, %v698_v1  ;;  %v5297_v7 = vpop.f32.mrb[4].mxu0 }
  0xf7   : > { %v6616_v8 = vpack.c.bf16 %v952_v3, %v951_v2  ;;  %v579_v9 = vadd.f32 %v5297_v7, %v6608_v50  ;;  %v570_v10 = vpop.f32.mrb[5].mxu0  ;;  %v6167_v7 = vld [vmem:[%s8101_s4 + $0x148] sm:$0xff]  }
  0xf8   : > { %v6619_v11 = vpack.c.bf16 %v950_v6, %v949_v4  ;;  %v571_v12 = vadd.f32 %v6608_v50, %v570_v10  ;;  %v5298_v14 = vpop.f32.mrb[6].mxu0 }
  0xf9   : > { %1008 = vst [vmem:[#allocation2 + $0x18] sm:$0xff] %v6616_v8  ;;  %v703_v15 = vmax.f32 %v579_v9, 0.0  ;;  %v582_v52 = vadd.f32 %v5298_v14, %v6608_v50  ;;  %v573_v53 = vpop.f32.mrb[7].mxu0  ;;  %v1103_v45 = vrot.slane %v6616_v8, 7 }
  0xfa   : > { %1007 = vst [vmem:[#allocation2 + $0x10] sm:$0xff] %v6619_v11  ;;  %v701_v46 = vmax.f32 %v571_v12, 0.0  ;;  %v574_v54 = vadd.f32 %v6608_v50, %v573_v53  ;;  %v1101_v55 = vrot.slane %v6619_v11, 7  ;;  %v6175_v53 = vld [vmem:[%s8101_s4 + $0x18] sm:$0xff]  }
  0xfb   : > { %v704_v56 = vmax.f32 %v582_v52, 0.0  ;;  %v955_v61 = vmul.f32 %v6533_v17, %v703_v15  ;;  %v6174_v17 = vld [vmem:[%s8101_s4 + $0x10] sm:$0xff]  }
  0xfc   : > { %v702_v58 = vmax.f32 %v574_v54, 0.0  ;;  %v1102_v59 = vsel %vm1097_vm2, %v6524_v13, %v1101_v55  ;;  %v1104_v60 = vsel %vm1097_vm2, %v1101_v55, %v1103_v45  ;;  %v953_v63 = vmul.f32 %v6531_v16, %v701_v46 }
  0xfd   : > { %v956_v62 = vmul.f32 %v6543_v19, %v704_v56  ;;  %5344 = vmatmul.mubr.bf16.vlgmr.msra.gmra.mrb[36].mxu0 %v1102_v59  ;;  %v6168_v56 = vld [vmem:[%s8101_s4 + $0x150] sm:$0xff]  }
  0xfe   : > { %v954_v0 = vmul.f32 %v6541_v18, %v702_v58  ;;  %v5301_v1 = vpop.f32.mrb[8].mxu0  ;;  %5347 = vmatprep.mubr.bf16.mxu0 %v1104_v60  ;;  %5380 = vmatpush3.bf16.msra.mxu0 %v6564_v28 }
  0xff   : > { %v6639_v2 = vpack.c.bf16 %v956_v62, %v955_v61  ;;  %v595_v3 = vadd.f32 %v5301_v1, %v6608_v50  ;;  %v586_v13 = vpop.f32.mrb[9].mxu0  ;;  %5381 = vmatprep.subr.bf16.mxu0 %v6172_v57  ;;  %v6169_v1 = vld [vmem:[%s8101_s4 + $0x158] sm:$0xff]  }
 0x100   : > { %v6645_v19 = vpack.c.bf16 %v954_v0, %v953_v63  ;;  %v587_v16 = vadd.f32 %v6608_v50, %v586_v13  ;;  %v5302_v4 = vpop.f32.mrb[10].mxu0 }
 0x101   : > { %1010 = vst [vmem:[#allocation2 + $0x28] sm:$0xff] %v6639_v2  ;;  %v707_v18 = vmax.f32 %v595_v3, 0.0  ;;  %v598_v28 = vadd.f32 %v5302_v4, %v6608_v50  ;;  %v589_v6 = vpop.f32.mrb[11].mxu0  ;;  %v1107_v52 = vrot.slane %v6639_v2, 7 }
 0x102   : > { %1009 = vst [vmem:[#allocation2 + $0x20] sm:$0xff] %v6645_v19  ;;  %v705_v9 = vmax.f32 %v587_v16, 0.0  ;;  %v590_v10 = vadd.f32 %v6608_v50, %v589_v6  ;;  %5555 = vmatprep.mubr.bf16.mxu1 %v6645_v19  ;;  %5382 = vmatpush3.bf16.msra.mxu0 %v6172_v57  ;;  %v1105_v14 = vrot.slane %v6645_v19, 7 }
 0x103   : > { %v708_v12 = vmax.f32 %v598_v28, 0.0  ;;  %5556 = vmatmul.mubr.bf16.vlgmr.msra.gmra.mrb[0].mxu1 %v6639_v2  ;;  %5383 = vmatprep.subr.bf16.mxu0 %v6174_v17  ;;  %v959_v46 = vmul.f32 %v6549_v22, %v707_v18  ;;  %v6178_v28 = vld [vmem:[%s8101_s4 + $0x28] sm:$0xff]  }
 0x104   : > { %v706_v15 = vmax.f32 %v590_v10, 0.0  ;;  %5588 = vmatpush3.bf16.msra.mxu1 %v6538_v5  ;;  %v1106_v55 = vsel %vm1097_vm2, %v1103_v45, %v1105_v14  ;;  %v957_v57 = vmul.f32 %v6545_v20, %v705_v9  ;;  %v1108_v59 = vsel %vm1097_vm2, %v1105_v14, %v1107_v52  ;;  %v6177_v20 = vld [vmem:[%s8101_s4 + $0x20] sm:$0xff]  }
 0x105   : > { %v960_v54 = vmul.f32 %v6551_v23, %v708_v12  ;;  %5589 = vmatprep.subr.bf16.mxu1 %v6167_v7  ;;  %5348 = vmatmul.mubr.bf16.gmra.mrb[40].mxu0 %v1106_v55  ;;  %v6170_v10 = vld [vmem:[%s8101_s4 + $0x160] sm:$0xff]  }
 0x106   : > { %v958_v5 = vmul.f32 %v6547_v21, %v706_v15  ;;  %v5305_v58 = vpop.f32.mrb[12].mxu0  ;;  %5351 = vmatprep.mubr.bf16.mxu0 %v1108_v59  ;;  %5384 = vmatpush3.bf16.msra.mxu0 %v6174_v17 }
 0x107   : > { %v6672_v60 = vpack.c.bf16 %v960_v54, %v959_v46  ;;  %v611_v22 = vadd.f32 %v5305_v58, %v6608_v50  ;;  %v602_v23 = vpop.f32.mrb[13].mxu0  ;;  %5385 = vmatprep.subr.bf16.mxu0 %v6175_v53 }
 0x108   : > { %v6675_v45 = vpack.c.bf16 %v958_v5, %v957_v57  ;;  %v603_v61 = vadd.f32 %v6608_v50, %v602_v23  ;;  %v5306_v62 = vpop.f32.mrb[14].mxu0  ;;  %5590 = vmatpush3.bf16.msra.mxu1 %v6167_v7  ;;  %v6173_v5 = vld [vmem:[%s8101_s4 + $0x168] sm:$0xff]  }
 0x109   : > { %1012 = vst [vmem:[#allocation2 + $0x38] sm:$0xff] %v6672_v60  ;;  %v711_v21 = vmax.f32 %v611_v22, 0.0  ;;  %v614_v63 = vadd.f32 %v5306_v62, %v6608_v50  ;;  %v605_v0 = vpop.f32.mrb[15].mxu0  ;;  %5591 = vmatprep.subr.bf16.mxu1 %v6168_v56  ;;  %v1111_v18 = vrot.slane %v6672_v60, 7 }
 0x10a   : > { %1011 = vst [vmem:[#allocation2 + $0x30] sm:$0xff] %v6675_v45  ;;  %v709_v3 = vmax.f32 %v603_v61, 0.0  ;;  %v606_v13 = vadd.f32 %v6608_v50, %v605_v0  ;;  %5559 = vmatprep.mubr.bf16.mxu1 %v6675_v45  ;;  %v1109_v16 = vrot.slane %v6675_v45, 7  ;;  %5386 = vmatpush3.bf16.msra.mxu0 %v6175_v53 }
 0x10b   : > { %v712_v17 = vmax.f32 %v614_v63, 0.0  ;;  %5560 = vmatmul.mubr.bf16.gmra.mrb[4].mxu1 %v6672_v60  ;;  %5387 = vmatprep.subr.bf16.mxu0 %v6177_v20  ;;  %v963_v6 = vmul.f32 %v6557_v26, %v711_v21 }
 0x10c   : > { %v710_v4 = vmax.f32 %v606_v13, 0.0  ;;  %5592 = vmatpush3.bf16.msra.mxu1 %v6168_v56  ;;  %v1110_v9 = vsel %vm1097_vm2, %v1107_v52, %v1109_v16  ;;  %v961_v12 = vmul.f32 %v6553_v24, %v709_v3  ;;  %v1112_v53 = vsel %vm1097_vm2, %v1109_v16, %v1111_v18  ;;  %v6180_v24 = vld [vmem:[%s8101_s4 + $0x30] sm:$0xff]  }
 0x10d   : > { %v964_v7 = vmul.f32 %v6559_v27, %v712_v17  ;;  %5593 = vmatprep.subr.bf16.mxu1 %v6169_v1  ;;  %5352 = vmatmul.mubr.bf16.gmra.mrb[44].mxu0 %v1110_v9 }
 0x10e   : > { %v962_v14 = vmul.f32 %v6555_v25, %v710_v4  ;;  %v5309_v15 = vpop.f32.mrb[16].mxu0  ;;  %5355 = vmatprep.mubr.bf16.mxu0 %v1112_v53  ;;  %5388 = vmatpush3.bf16.msra.mxu0 %v6177_v20  ;;  %v6181_v20 = vld [vmem:[%s8101_s4 + $0x38] sm:$0xff]  }
 0x10f   : > { %v6704_v46 = vpack.c.bf16 %v964_v7, %v963_v6  ;;  %v627_v26 = vadd.f32 %v5309_v15, %v6608_v50  ;;  %v618_v27 = vpop.f32.mrb[17].mxu0  ;;  %5389 = vmatprep.subr.bf16.mxu0 %v6178_v28 }
 0x110   : > { %v6707_v52 = vpack.c.bf16 %v962_v14, %v961_v12  ;;  %v619_v54 = vadd.f32 %v6608_v50, %v618_v27  ;;  %v5310_v55 = vpop.f32.mrb[18].mxu0  ;;  %5594 = vmatpush3.bf16.msra.mxu1 %v6169_v1  ;;  %v6176_v1 = vld [vmem:[%s8101_s4 + $0x170] sm:$0xff]  }
 0x111   : > { %1014 = vst [vmem:[#allocation2 + $0x48] sm:$0xff] %v6704_v46  ;;  %v715_v25 = vmax.f32 %v627_v26, 0.0  ;;  %v630_v56 = vadd.f32 %v5310_v55, %v6608_v50  ;;  %v621_v57 = vpop.f32.mrb[19].mxu0  ;;  %5595 = vmatprep.subr.bf16.mxu1 %v6170_v10  ;;  %v1115_v62 = vrot.slane %v6704_v46, 7 }
 0x112   : > { %1013 = vst [vmem:[#allocation2 + $0x40] sm:$0xff] %v6707_v52  ;;  %v713_v58 = vmax.f32 %v619_v54, 0.0  ;;  %v622_v59 = vadd.f32 %v6608_v50, %v621_v57  ;;  %5563 = vmatprep.mubr.bf16.mxu1 %v6707_v52  ;;  %v1113_v23 = vrot.slane %v6707_v52, 7  ;;  %5390 = vmatpush3.bf16.msra.mxu0 %v6178_v28 }
 0x113   : > { %v716_v22 = vmax.f32 %v630_v56, 0.0  ;;  %5564 = vmatmul.mubr.bf16.gmra.mrb[8].mxu1 %v6704_v46  ;;  %5391 = vmatprep.subr.bf16.mxu0 %v6180_v24  ;;  %v967_v21 = vmul.f32 %v6571_v31, %v715_v25  ;;  %v6765_v25 = vld [vmem:[%s8101_s4 + $0x180] sm:$0xff]  }
 0x114   : > { %v714_v61 = vmax.f32 %v622_v59, 0.0  ;;  %5596 = vmatpush3.bf16.msra.mxu1 %v6170_v10  ;;  %v1114_v0 = vsel %vm1097_vm2, %v1111_v18, %v1113_v23  ;;  %v965_v3 = vmul.f32 %v6566_v29, %v713_v58  ;;  %v1116_v16 = vsel %vm1097_vm2, %v1113_v23, %v1115_v62  ;;  %v6745_v29 = vld [vmem:[%s8101_s4 + $0x80] sm:$0xff]   ;;  %v6179_v10 = vld [vmem:[%s8101_s4 + $0x178] sm:$0xff]  }
 0x115   : > { %v968_v63 = vmul.f32 %v6573_v32, %v716_v22  ;;  %5597 = vmatprep.subr.bf16.mxu1 %v6173_v5  ;;  %5356 = vmatmul.mubr.bf16.gmra.mrb[48].mxu0 %v1114_v0 }
 0x116   : > { %v966_v13 = vmul.f32 %v6568_v30, %v714_v61  ;;  %v5313_v17 = vpop.f32.mrb[20].mxu0  ;;  %5359 = vmatprep.mubr.bf16.mxu0 %v1116_v16  ;;  %5392 = vmatpush3.bf16.msra.mxu0 %v6180_v24 }
 0x117   : > { %v6736_v4 = vpack.c.bf16 %v968_v63, %v967_v21  ;;  %v643_v31 = vadd.f32 %v5313_v17, %v6608_v50  ;;  %v634_v32 = vpop.f32.mrb[21].mxu0  ;;  %5393 = vmatprep.subr.bf16.mxu0 %v6181_v20 }
 0x118   : > { %v6739_v18 = vpack.c.bf16 %v966_v13, %v965_v3  ;;  %v635_v28 = vadd.f32 %v6608_v50, %v634_v32  ;;  %v5314_v6 = vpop.f32.mrb[22].mxu0  ;;  %5598 = vmatpush3.bf16.msra.mxu1 %v6173_v5 }
 0x119   : > { %1016 = vst [vmem:[#allocation2 + $0x58] sm:$0xff] %v6736_v4  ;;  %v719_v30 = vmax.f32 %v643_v31, 0.0  ;;  %v646_v7 = vadd.f32 %v5314_v6, %v6608_v50  ;;  %v637_v9 = vpop.f32.mrb[23].mxu0  ;;  %5599 = vmatprep.subr.bf16.mxu1 %v6176_v1  ;;  %v1119_v27 = vrot.slane %v6736_v4, 7  ;;  %v1025_v6 = vld [vmem:[#allocation2] sm:$0xc0] }
 0x11a   : > { %1015 = vst [vmem:[#allocation2 + $0x50] sm:$0xff] %v6739_v18  ;;  %v717_v12 = vmax.f32 %v635_v28, 0.0  ;;  %v638_v14 = vadd.f32 %v6608_v50, %v637_v9  ;;  %5567 = vmatprep.mubr.bf16.mxu1 %v6739_v18  ;;  %v1117_v53 = vrot.slane %v6739_v18, 7  ;;  %5394 = vmatpush3.bf16.msra.mxu0 %v6181_v20 }
 0x11b   : > { %v720_v15 = vmax.f32 %v646_v7, 0.0  ;;  %5568 = vmatmul.mubr.bf16.gmra.mrb[12].mxu1 %v6736_v4  ;;  %5431 = vmatprep.subr.bf16.mxu0 %v6745_v29  ;;  %v971_v54 = vmul.f32 %v6579_v35, %v719_v30 }
 0x11c   : > { %v718_v26 = vmax.f32 %v638_v14, 0.0  ;;  %5600 = vmatpush3.bf16.msra.mxu1 %v6176_v1  ;;  %v1118_v24 = vsel %vm1097_vm2, %v1115_v62, %v1117_v53  ;;  %v969_v56 = vmul.f32 %v6575_v33, %v717_v12  ;;  %v1120_v58 = vsel %vm1097_vm2, %v1117_v53, %v1119_v27  ;;  %v6784_v1 = vld [vmem:[#allocation2] sm:$0xff] }
 0x11d   : > { %v972_v55 = vmul.f32 %v6581_v36, %v720_v15  ;;  %5601 = vmatprep.subr.bf16.mxu1 %v6179_v10  ;;  %5360 = vmatmul.mubr.bf16.gmra.mrb[52].mxu0 %v1118_v24  ;;  %8141 = vst [vmem:[#allocation3_spill] sm:$0xff] %v6784_v1  ;;  %v6787_v3 = vshrl.u32 %v6784_v1, 16  ;;  %v6791_v16 = vshll.u32 %v6784_v1, 16 }
 0x11e   : > { %v970_v57 = vmul.f32 %v6577_v34, %v718_v26  ;;  %v5317_v5 = vpop.f32.mrb[24].mxu0  ;;  %5363 = vmatprep.mubr.bf16.mxu0 %v1120_v58 }
 0x11f   : > { %v6770_v59 = vpack.c.bf16 %v972_v55, %v971_v54  ;;  %v659_v35 = vadd.f32 %v5317_v5, %v6608_v50  ;;  %v650_v36 = vpop.f32.mrb[25].mxu0 }
 0x120   : > { %v6773_v22 = vpack.c.bf16 %v970_v57, %v969_v56  ;;  %v651_v23 = vadd.f32 %v6608_v50, %v650_v36  ;;  %v5318_v61 = vpop.f32.mrb[26].mxu0  ;;  %5602 = vmatpush3.bf16.msra.mxu1 %v6179_v10  ;;  %v1383_v56 = vshll.u32 %v1025_v6, 16 }
 0x121   : > { %1018 = vst [vmem:[#allocation2 + $0x68] sm:$0xff] %v6770_v59  ;;  %v723_v33 = vmax.f32 %v659_v35, 0.0  ;;  %v662_v34 = vadd.f32 %v5318_v61, %v6608_v50  ;;  %v653_v62 = vpop.f32.mrb[27].mxu0  ;;  %5639 = vmatprep.subr.bf16.mxu1 %v6765_v25  ;;  %v1123_v17 = vrot.slane %v6770_v59, 7  ;;  %v6814_v35 = vshll.u32 %v6619_v11, 16 }
 0x122   : > { %1017 = vst [vmem:[#allocation2 + $0x60] sm:$0xff] %v6773_v22  ;;  %v721_v20 = vmax.f32 %v651_v23, 0.0  ;;  %v654_v21 = vadd.f32 %v6608_v50, %v653_v62  ;;  %5571 = vmatprep.mubr.bf16.mxu1 %v6773_v22  ;;  %v1121_v0 = vrot.slane %v6773_v22, 7 }
 0x123   : > { %v724_v63 = vmax.f32 %v662_v34, 0.0  ;;  %5572 = vmatmul.mubr.bf16.gmra.mrb[16].mxu1 %v6770_v59  ;;  %v975_v31 = vmul.f32 %v6587_v39, %v723_v33  ;;  %v1390_v39 = vrot.slane %v6787_v3, 6 }
 0x124   : > { %v722_v13 = vmax.f32 %v654_v21, 0.0  ;;  %v1122_v28 = vsel %vm1097_vm2, %v1119_v27, %v1121_v0  ;;  %v973_v30 = vmul.f32 %v6583_v37, %v721_v20  ;;  %v1124_v10 = vsel %vm1097_vm2, %v1121_v0, %v1123_v17 }
 0x125   : > { %v976_v32 = vmul.f32 %v6589_v40, %v724_v63  ;;  %5364 = vmatmul.mubr.bf16.gmra.mrb[56].mxu0 %v1122_v28  ;;  %v1380_v27 = vshrl.u32 %v1025_v6, 16  ;;  %v1393_v37 = vrot.slane %v6791_v16, 7 }
 0x126   : > { %v974_v7 = vmul.f32 %v6585_v38, %v722_v13  ;;  %v5321_v9 = vpop.f32.mrb[28].mxu0  ;;  %5367 = vmatprep.mubr.bf16.mxu0 %v1124_v10 }
 0x127   : > { %v6799_v12 = vpack.c.bf16 %v976_v32, %v975_v31  ;;  %v675_v14 = vadd.f32 %v5321_v9, %v6608_v50  ;;  %v666_v15 = vpop.f32.mrb[29].mxu0 }
 0x128   : > { %v1001_v40 = vpack.c.bf16 %v974_v7, %v973_v30  ;;  %v667_v53 = vadd.f32 %v6608_v50, %v666_v15  ;;  %v5322_v26 = vpop.f32.mrb[30].mxu0  ;;  %v6853_v15 = vshll.u32 %v6616_v8, 16 }
 0x129   : > { %1020 = vst [vmem:[#allocation2 + $0x78] sm:$0xff] %v6799_v12  ;;  %v727_v38 = vmax.f32 %v675_v14, 0.0  ;;  %v678_v54 = vadd.f32 %v5322_v26, %v6608_v50  ;;  %v669_v55 = vpop.f32.mrb[31].mxu0  ;;  %v6808_v24 = vshrl.u32 %v6799_v12, 16  ;;  %v6818_v61 = vshll.u32 %v6799_v12, 16 }
 0x12a   : > { %1019 = vst [vmem:[#allocation2 + $0x70] sm:$0xff] %v1001_v40  ;;  %v725_v57 = vmax.f32 %v667_v53, 0.0  ;;  %v670_v5 = vadd.f32 %v6608_v50, %v669_v55  ;;  %v6811_v58 = vshrl.u32 %v1001_v40, 16  ;;  %5575 = vmatprep.mubr.bf16.mxu1 %v1001_v40  ;;  %v1125_v33 = vrot.slane %v1001_v40, 7  ;;  %8142 = vst [vmem:[#allocation4_spill] sm:$0xff] %v6853_v15 }
 0x12b   : > { %v728_v36 = vmax.f32 %v678_v54, 0.0  ;;  %v8105_v23 = vrot.slane %v6808_v24, 7  ;;  %5576 = vmatmul.mubr.bf16.gmra.mrb[20].mxu1 %v6799_v12  ;;  %v6822_v20 = vshll.u32 %v1001_v40, 16  ;;  %v1127_v21 = vrot.slane %v6799_v12, 7 }
 0x12c   : > { %v726_v34 = vmax.f32 %v670_v5, 0.0  ;;  %v8106_v62 = vrot.slane %v6811_v58, 7  ;;  %v979_v63 = vmul.f32 %v6595_v43, %v727_v38  ;;  %v1126_v31 = vsel %vm1097_vm2, %v1123_v17, %v1125_v33 }
 0x12d   : > { %v980_v0 = vmul.f32 %v6597_v44, %v728_v36  ;;  %v6830_v13 = vor.u32 %v6818_v61, %v8105_v23  ;;  %v977_v32 = vmul.f32 %v6591_v41, %v725_v57  ;;  %5368 = vmatmul.mubr.bf16.gmra.mrb[60].mxu0 %v1126_v31  ;;  %v1128_v43 = vsel %vm1097_vm2, %v1125_v33, %v1127_v21 }
 0x12e   : > { %v978_v28 = vmul.f32 %v6593_v42, %v726_v34  ;;  %v5325_v6 = vpop.f32.mrb[32].mxu0  ;;  %v6838_v30 = vor.u32 %v6822_v20, %v8106_v62  ;;  %5371 = vmatprep.mubr.bf16.mxu0 %v1128_v43  ;;  %v6844_v17 = vrot.slane %v1380_v27, 6  ;;  %v6846_v41 = vrot.slane %v1383_v56, 7 }
 0x12f   : > { %v6841_v44 = vpack.c.bf16 %v980_v0, %v979_v63  ;;  %v691_v7 = vadd.f32 %v5325_v6, %v6608_v50  ;;  %v682_v9 = vpop.f32.mrb[33].mxu0  ;;  %v6850_v14 = vshrl.u32 %v6619_v11, 16  ;;  %v2936_v38 = vrot.slane %v6814_v35, 1 }
 0x130   : > { %v1003_v42 = vpack.c.bf16 %v978_v28, %v977_v32  ;;  %v683_v10 = vadd.f32 %v6608_v50, %v682_v9  ;;  %v5326_v12 = vpop.f32.mrb[34].mxu0  ;;  %v6862_v54 = vshll.u32 %v6645_v19, 16  ;;  %v6960_v28 = vshrl.u32 %v6672_v60, 16 }
 0x131   : > { %1022 = vst [vmem:[#allocation2 + $0x88] sm:$0xff] %v6841_v44  ;;  %v731_v40 = vmax.f32 %v691_v7, 0.0  ;;  %v694_v53 = vadd.f32 %v5326_v12, %v6608_v50  ;;  %v685_v26 = vpop.f32.mrb[35].mxu0  ;;  %v6858_v27 = vshrl.u32 %v6841_v44, 16  ;;  %v6871_v36 = vshll.u32 %v6841_v44, 16 }
 0x132   : > { %1021 = vst [vmem:[#allocation2 + $0x80] sm:$0xff] %v1003_v42  ;;  %v729_v11 = vmax.f32 %v683_v10, 0.0  ;;  %v686_v55 = vadd.f32 %v6608_v50, %v685_v26  ;;  %v6865_v56 = vshrl.u32 %v1003_v42, 16  ;;  %5579 = vmatprep.mubr.bf16.mxu1 %v1003_v42  ;;  %v1129_v33 = vrot.slane %v1003_v42, 7  ;;  %8150 = vst [vmem:[#allocation12_spill] sm:$0xff] %v6960_v28 }
 0x133   : > { %v732_v57 = vmax.f32 %v694_v53, 0.0  ;;  %v6868_v5 = vrot.slane %v6858_v27, 7  ;;  %5580 = vmatmul.mubr.bf16.gmra.mrb[24].mxu1 %v6841_v44  ;;  %v6875_v0 = vshll.u32 %v1003_v42, 16  ;;  %v8109_v50 = vrot.slane %v6841_v44, 7 }
 0x134   : > { %v730_v34 = vmax.f32 %v686_v55, 0.0  ;;  %v8104_v63 = vrot.slane %v6865_v56, 7  ;;  %v983_v31 = vmul.f32 %v6603_v49, %v731_v40  ;;  %v1130_v6 = vsel %vm1097_vm2, %v1127_v21, %v1129_v33 }
 0x135   : > { %v984_v32 = vmul.f32 %v6610_v51, %v732_v57  ;;  %v981_v43 = vmul.f32 %v6599_v47, %v729_v11  ;;  %5372 = vmatmul.mubr.bf16.gmra.mrb[64].mxu0 %v1130_v6  ;;  %v1132_v49 = vsel %vm1097_vm2, %v1129_v33, %v8109_v50  ;;  %v2937_v42 = vor.u32 %v2936_v38, %v6850_v14 }
 0x136   : > { %v982_v7 = vmul.f32 %v6601_v48, %v730_v34  ;;  %v6888_v9 = vor.u32 %v6875_v0, %v8104_v63  ;;  %5375 = vmatprep.mubr.bf16.mxu0 %v1132_v49  ;;  %v1399_v21 = vrot.slane %v6850_v14, 6  ;;  %v1402_v47 = vrot.slane %v6814_v35, 7 }
 0x137   : > { %v6893_v51 = vpack.c.bf16 %v984_v32, %v983_v31  ;;  %v2941_v12 = vrot.slane %v6853_v15, 1  ;;  %v1394_v40 = vor.u32 %v1393_v37, %v1390_v39  ;;  %v6911_v26 = vshrl.u32 %v6616_v8, 16 }
 0x138   : > { %v6898_v48 = vpack.c.bf16 %v982_v7, %v981_v43  ;;  %v2949_v38 = vrot.slane %v6862_v54, 1  ;;  %v1386_v11 = vor.u32 %v6846_v41, %v6844_v17  ;;  %v6921_v37 = vor.u32 %v1402_v47, %v1399_v21 }
 0x139   : > { %1024 = vst [vmem:[#allocation2 + $0x98] sm:$0xff] %v6893_v51  ;;  %v8107_v10 = vshrl.u32 %v6893_v51, 16  ;;  %v2333_v57 = vshll.u32 %v6893_v51, 16  ;;  %v2942_v39 = vsel %vm2930_vm3, %v2937_v42, %v2941_v12  ;;  %v6924_v33 = vshrl.u32 %v6645_v19, 16 }
 0x13a   : > { %1023 = vst [vmem:[#allocation2 + $0x90] sm:$0xff] %v6898_v48  ;;  %v8108_v53 = vshrl.u32 %v6898_v48, 16  ;;  %5583 = vmatprep.mubr.bf16.mxu1 %v6898_v48  ;;  %v6927_v8 = vshll.u32 %v6639_v2, 16  ;;  %v2325_v41 = vshll.u32 %v6898_v48, 16  ;;  %v6935_v34 = vshll.u32 %v6675_v45, 16 }
 0x13b   : > { %v2332_v55 = vrot.slane %v8107_v10, 7  ;;  %5584 = vmatmul.mubr.bf16.gmra.mrb[28].mxu1 %v6893_v51  ;;  %8143 = vst [vmem:[#allocation5_spill] sm:$0xff] %v6924_v33  ;;  %v1411_v32 = vrot.slane %v6853_v15, 7  ;;  %v2945_v6 = vor.u32 %v6911_v26, %v2941_v12  ;;  %v2953_v43 = vor.u32 %v2949_v38, %v6924_v33 }
 0x13c   : > { %8144 = vst [vmem:[#allocation6_spill] sm:$0xff] %v6927_v8  ;;  %v6931_v17 = vrot.slane %v8108_v53, 7  ;;  %5603 = vmatprep.mubr.bf16.mxu1 %v2942_v39  ;;  %8146 = vst [vmem:[#allocation8_spill] sm:$0xff] %v6935_v34  ;;  %v1408_v7 = vrot.slane %v6911_v26, 6  ;;  %v6947_v49 = vshrl.u32 %v6639_v2, 16  ;;  %v1395_v42 = vsel %vm1378_vm4, %v1386_v11, %v1394_v40 }
 0x13d   : > { %v6937_v31 = vor.u32 %v2333_v57, %v2332_v55  ;;  %v8110_v21 = vrot.slane %v6822_v20, 1  ;;  %v3037_v47 = vrot.slane %v6818_v61, 1  ;;  %v2950_v55 = vsel %vm2930_vm3, %v2945_v6, %v2949_v38  ;;  %v6183_v38 = vld [vmem:[%s8101_s4 + $0x188] sm:$0xff]  }
 0x13e   : > { %8145 = vst [vmem:[#allocation7_spill] sm:$0xff] %v6931_v17  ;;  %v6941_v19 = vor.u32 %v2325_v41, %v6931_v17  ;;  %8149 = vst [vmem:[#allocation11_spill] sm:$0xff] %v6947_v49  ;;  %v2957_v39 = vrot.slane %v6927_v8, 1  ;;  %v6956_v12 = vsel %vm1378_vm4, %v1394_v40, %v6921_v37  ;;  %v6963_v2 = vshll.u32 %v6672_v60, 16 }
 0x13f   : > { %8147 = vst [vmem:[#allocation9_spill] sm:$0xff] %v6937_v31  ;;  %v2965_v23 = vrot.slane %v6935_v34, 1  ;;  %v3033_v40 = vor.u32 %v8110_v21, %v6811_v58  ;;  %v6975_v6 = vshrl.u32 %v6675_v45, 16  ;;  %v6979_v10 = vor.u32 %v1411_v32, %v1408_v7 }
 0x140   : > { %8148 = vst [vmem:[#allocation10_spill] sm:$0xff] %v6941_v19  ;;  %8151 = vst [vmem:[#allocation13_spill] sm:$0xff] %v6963_v2  ;;  %v2958_v60 = vsel %vm2930_vm3, %v2953_v43, %v2957_v39  ;;  %v6982_v63 = vshll.u32 %v6707_v52, 16  ;;  %v3041_v50 = vor.u32 %v3037_v47, %v6808_v24  ;;  %v3045_v21 = vrot.slane %v6875_v0, 1 }
 0x141   : > { %v6965_v11 = vld [vmem:[#allocation2 + $0x90] sm:$0x7f]  ;;  %8152 = vst [vmem:[#allocation14_spill] sm:$0xff] %v6975_v6  ;;  %v6985_v53 = vsel %vm2930_vm3, %v3033_v40, %v3037_v47  ;;  %v8154_v45 = vrot.slane %v6841_v44, 7  ;;  %v2961_v32 = vor.u32 %v2957_v39, %v6947_v49  ;;  %v3053_v43 = vrot.slane %v6871_v36, 1 }
 0x142   : > { %v1133_v62 = vrot.slane %v6965_v11, 7  ;;  %8153 = vst [vmem:[#allocation15_spill] sm:$0xff] %v6982_v63  ;;  %v1507_v7 = vrot.slane %v6811_v58, 6  ;;  %v6184_v47 = vld [vmem:[%s8101_s4 + $0x190] sm:$0xff]   ;;  %v7001_v44 = vsel %vm2930_vm3, %v3041_v50, %v3045_v21  ;;  %v1516_v39 = vrot.slane %v6808_v24, 6 }
 0x143   : > { %5604 = vmatmul.mubr.bf16.vlgmr.msra.gmra.mrb[32].mxu1 %v2950_v55  ;;  %v2969_v55 = vor.u32 %v2965_v23, %v6975_v6  ;;  %v1519_v40 = vrot.slane %v6818_v61, 7  ;;  %v7013_v31 = vrot.slane %v2333_v57, 1  ;;  %v1525_v50 = vrot.slane %v6865_v56, 6  ;;  %v6185_v57 = vld [vmem:[%s8101_s4 + $0x198] sm:$0xff]  }
 0x144   : > { %v1134_v15 = vsel %vm1097_vm2, %v8154_v45, %v1133_v62  ;;  %5640 = vmatpush3.bf16.msra.mxu1 %v6765_v25  ;;  %5607 = vmatprep.mubr.bf16.mxu1 %v2958_v60  ;;  %v3049_v25 = vor.u32 %v3045_v21, %v6865_v56  ;;  %v1510_v62 = vrot.slane %v6822_v20, 7  ;;  %v3061_v60 = vrot.slane %v2325_v41, 1 }
 0x145   : > { %5376 = vmatmul.mubr.bf16.gmra.mrb[68].mxu0 %v1134_v15  ;;  %5641 = vmatprep.subr.bf16.mxu1 %v6183_v38  ;;  %v3057_v15 = vor.u32 %v3053_v43, %v6858_v27  ;;  %v1520_v21 = vor.u32 %v1519_v40, %v1516_v39  ;;  %v8155_v19 = vshrl.u32 %v6898_v48, 16  ;;  %v1528_v1 = vrot.slane %v6875_v0, 7 }
 0x146   : > { %5395 = vmatprep.mubr.bf16.mxu0 %v1395_v42  ;;  %v7009_v45 = vsel %vm2930_vm3, %v3049_v25, %v3053_v43  ;;  %v7011_v17 = vor.u32 %v1510_v62, %v1507_v7  ;;  %v2966_v41 = vsel %vm2930_vm3, %v2961_v32, %v2965_v23  ;;  %v2973_v43 = vrot.slane %v6963_v2, 1  ;;  %v6189_v62 = vld [vmem:[%s8101_s4 + $0x88] sm:$0xff]  }
 0x147   : > { %v7017_v42 = vsel %vm2930_vm3, %v3057_v15, %v3061_v60  ;;  %v3065_v61 = vor.u32 %v3061_v60, %v8155_v19  ;;  %v1537_v7 = vrot.slane %v6871_v36, 7  ;;  %v1420_v25 = vrot.slane %v6862_v54, 7 }
 0x148   : > { %5642 = vmatpush3.bf16.msra.mxu1 %v6183_v38  ;;  %v1534_v38 = vrot.slane %v6858_v27, 6  ;;  %v7032_v48 = vsel %vm1378_vm4, %v7011_v17, %v1520_v21  ;;  %v1529_v0 = vor.u32 %v1528_v1, %v1525_v50  ;;  %v2974_v19 = vsel %vm2930_vm3, %v2969_v55, %v2973_v43 }
 0x149   : > { %5643 = vmatprep.subr.bf16.mxu1 %v6184_v47  ;;  %v7036_v23 = vsel %vm2930_vm3, %v3065_v61, %v7013_v31  ;;  %v1426_v32 = vrot.slane %v6947_v49, 6  ;;  %v2981_v27 = vrot.slane %v6982_v63, 1  ;;  %v1429_v40 = vrot.slane %v6927_v8, 7 }
 0x14a   : > { %v1538_v39 = vor.u32 %v1537_v7, %v1534_v38  ;;  %v7046_v15 = vsel %vm1378_vm4, %v1520_v21, %v1529_v0  ;;  %v1541_v1 = vshrl.u32 %v6965_v11, 16  ;;  %v1544_v55 = vshll.u32 %v6965_v11, 16  ;;  %v2912_v11 = vld [vmem:[#allocation2 + $0xa0] sm:$0x1]  ;;  %v6190_v7 = vld [vmem:[%s8101_s4 + $0x90] sm:$0xff]  }
 0x14b   : > { %5608 = vmatmul.mubr.bf16.gmra.mrb[0].mxu1 %v2966_v41  ;;  %8156 = vst [vmem:[#allocation16_spill] sm:$0xff] %v7046_v15  ;;  %v7051_v60 = vshrl.u32 %v6707_v52, 16  ;;  %v7054_v50 = vshll.u32 %v6704_v46, 16  ;;  %v1413_v61 = vsel %vm1378_vm4, %v6921_v37, %v6979_v10  ;;  %v7067_v52 = vshll.u32 %v6739_v18, 16 }
 0x14c   : > { %5611 = vmatprep.mubr.bf16.mxu1 %v2974_v19  ;;  %5644 = vmatpush3.bf16.msra.mxu1 %v6184_v47  ;;  %v6186_v47 = vld [vmem:[%s8101_s4 + $0x1a0] sm:$0xff]   ;;  %v7064_v21 = vsel %vm1378_vm4, %v1529_v0, %v1538_v39  ;;  %v1546_v41 = vrot.slane %v1544_v55, 7  ;;  %v2977_v38 = vor.u32 %v2973_v43, %v6960_v28  ;;  %v8161_v0 = vrot.slane %v6924_v33, 6 }
 0x14d   : > { %8157 = vst [vmem:[#allocation17_spill] sm:$0xff] %v7051_v60  ;;  %8158 = vst [vmem:[#allocation18_spill] sm:$0xff] %v7054_v50  ;;  %5396 = vmatmul.mubr.bf16.vlgmr.msra.gmra.mrb[36].mxu0 %v6956_v12  ;;  %5645 = vmatprep.subr.bf16.mxu1 %v6185_v57  ;;  %v1543_v12 = vrot.slane %v1541_v1, 6  ;;  %v2985_v37 = vor.u32 %v2981_v27, %v7051_v60  ;;  %v1430_v8 = vor.u32 %v1429_v40, %v1426_v32 }
 0x14e   : > { %8159 = vst [vmem:[#allocation19_spill] sm:$0xff] %v7064_v21  ;;  %8160 = vst [vmem:[#allocation20_spill] sm:$0xff] %v7067_v52  ;;  %5399 = vmatprep.mubr.bf16.mxu0 %v1413_v61  ;;  %5432 = vmatpush3.bf16.msra.mxu0 %v6745_v29  ;;  %v1421_v19 = vor.u32 %v1420_v25, %v8161_v0  ;;  %v3075_v49 = vshll.u32 %v2912_v11, 16  ;;  %v2982_v29 = vsel %vm2930_vm3, %v2977_v38, %v2981_v27  ;;  %v6188_v21 = vld [vmem:[%s8101_s4 + $0x1a8] sm:$0xff]   ;;  %v6192_v11 = vld [vmem:[%s8101_s4 + $0x98] sm:$0xff]  }
 0x14f   : > { %5433 = vmatprep.subr.bf16.mxu0 %v6189_v62  ;;  %v1547_v61 = vor.u32 %v1546_v41, %v1543_v12  ;;  %v2989_v1 = vrot.slane %v7054_v50, 1  ;;  %v1435_v43 = vrot.slane %v6975_v6, 6  ;;  %v1438_v55 = vrot.slane %v6935_v34, 7 }
 0x150   : > { %5646 = vmatpush3.bf16.msra.mxu1 %v6185_v57  ;;  %v1444_v15 = vrot.slane %v6960_v28, 6  ;;  %v1447_v25 = vrot.slane %v6963_v2, 7  ;;  %v2997_v57 = vrot.slane %v7067_v52, 1  ;;  %v7091_v27 = vshrl.u32 %v6704_v46, 16 }
 0x151   : > { %5647 = vmatprep.subr.bf16.mxu1 %v6186_v47  ;;  %v7088_v32 = vsel %vm1378_vm4, %v1538_v39, %v1547_v61  ;;  %v2990_v40 = vsel %vm2930_vm3, %v2985_v37, %v2989_v1  ;;  %v7099_v41 = vshrl.u32 %v6739_v18, 16  ;;  %v1422_v46 = vsel %vm1378_vm4, %v6979_v10, %v1421_v19  ;;  %v6191_v61 = vld [vmem:[%s8101_s4 + $0x1b0] sm:$0xff]  }
 0x152   : > { %5434 = vmatpush3.bf16.msra.mxu0 %v6189_v62  ;;  %8162 = vst [vmem:[#allocation21_spill] sm:$0xff] %v7091_v27  ;;  %v7102_v62 = vshll.u32 %v6736_v4, 16  ;;  %v7106_v39 = vrot.slane %v3075_v49, 1  ;;  %v7109_v38 = vshrl.u32 %v6773_v22, 16  ;;  %v7112_v37 = vshrl.u32 %v6770_v59, 16 }
 0x153   : > { %5612 = vmatmul.mubr.bf16.gmra.mrb[4].mxu1 %v2982_v29  ;;  %5435 = vmatprep.subr.bf16.mxu0 %v6190_v7  ;;  %8163 = vst [vmem:[#allocation22_spill] sm:$0xff] %v7099_v41  ;;  %v1431_v18 = vsel %vm1378_vm4, %v1421_v19, %v1430_v8  ;;  %v1439_v0 = vor.u32 %v1438_v55, %v1435_v43  ;;  %v1456_v29 = vrot.slane %v6982_v63, 7  ;;  %v7125_v19 = vshll.u32 %v6770_v59, 16  ;;  %v7145_v63 = vld [vmem:[#allocation2 + $0x20] sm:$0xff] }
 0x154   : > { %8164 = vst [vmem:[#allocation23_spill] sm:$0xff] %v7102_v62  ;;  %5615 = vmatprep.mubr.bf16.mxu1 %v2990_v40  ;;  %5648 = vmatpush3.bf16.msra.mxu1 %v6186_v47  ;;  %v1448_v10 = vor.u32 %v1447_v25, %v1444_v15  ;;  %v3001_v49 = vor.u32 %v2997_v57, %v7099_v41  ;;  %v1453_v47 = vrot.slane %v7051_v60, 6  ;;  %v7122_v40 = vshll.u32 %v6773_v22, 16  ;;  %v6193_v15 = vld [vmem:[%s8101_s4 + $0xa0] sm:$0xff]   ;;  %v6194_v60 = vld [vmem:[%s8101_s4 + $0xa8] sm:$0xff]  }
 0x155   : > { %5400 = vmatmul.mubr.bf16.gmra.mrb[40].mxu0 %v1422_v46  ;;  %5649 = vmatprep.subr.bf16.mxu1 %v6188_v21  ;;  %v1462_v43 = vrot.slane %v7091_v27, 6  ;;  %v1465_v55 = vrot.slane %v7054_v50, 7  ;;  %v7133_v25 = vshrl.u32 %v6736_v4, 16  ;;  %v3005_v22 = vrot.slane %v7102_v62, 1  ;;  %v6195_v4 = vld [vmem:[%s8101_s4 + $0x1b8] sm:$0xff]  }
 0x156   : > { %5403 = vmatprep.mubr.bf16.mxu0 %v1431_v18  ;;  %5436 = vmatpush3.bf16.msra.mxu0 %v6190_v7  ;;  %v2993_v7 = vor.u32 %v2989_v1, %v7091_v27  ;;  %v1440_v50 = vsel %vm1378_vm4, %v1430_v8, %v1439_v0  ;;  %v1449_v1 = vsel %vm1378_vm4, %v1439_v0, %v1448_v10  ;;  %v3013_v12 = vrot.slane %v7122_v40, 1  ;;  %v7156_v0 = vld [vmem:[#allocation2 + $0x18] sm:$0xff] }
 0x157   : > { %5437 = vmatprep.subr.bf16.mxu0 %v6192_v11  ;;  %v3006_v59 = vsel %vm2930_vm3, %v3001_v49, %v3005_v22  ;;  %v1457_v46 = vor.u32 %v1456_v29, %v1453_v47  ;;  %v1466_v18 = vor.u32 %v1465_v55, %v1462_v43  ;;  %v3021_v8 = vrot.slane %v7125_v19, 1 }
 0x158   : > { %5650 = vmatpush3.bf16.msra.mxu1 %v6188_v21  ;;  %v2998_v21 = vsel %vm2930_vm3, %v2993_v7, %v2997_v57  ;;  %v1471_v27 = vrot.slane %v7099_v41, 6  ;;  %v1474_v57 = vrot.slane %v7067_v52, 7  ;;  %v1483_v49 = vrot.slane %v7102_v62, 7  ;;  %v7183_v41 = vld [vmem:[#allocation2 + $0x28] sm:$0xff] }
 0x159   : > { %5651 = vmatprep.subr.bf16.mxu1 %v6191_v61  ;;  %v1489_v29 = vrot.slane %v7109_v38, 6  ;;  %v1492_v43 = vrot.slane %v7122_v40, 7  ;;  %v1498_v55 = vrot.slane %v7112_v37, 6  ;;  %v1501_v7 = vrot.slane %v7125_v19, 7 }
 0x15a   : > { %5438 = vmatpush3.bf16.msra.mxu0 %v6192_v11  ;;  %v1480_v11 = vrot.slane %v7133_v25, 6  ;;  %v8166_v47 = vrot.slane %v7112_v37, 7  ;;  %v8167_v2 = vrot.slane %v7109_v38, 7  ;;  %v8168_v52 = vshll.u32 %v7145_v63, 16 }
 0x15b   : > { %5616 = vmatmul.mubr.bf16.gmra.mrb[8].mxu1 %v2998_v21  ;;  %5439 = vmatprep.subr.bf16.mxu0 %v6193_v15  ;;  %v8165_v21 = vrot.slane %v6924_v33, 7  ;;  %v1502_v28 = vor.u32 %v1501_v7, %v1498_v55  ;;  %v8133_v33 = vshll.u32 %v7183_v41, 16 }
 0x15c   : > { %5619 = vmatprep.mubr.bf16.mxu1 %v3006_v59  ;;  %5652 = vmatpush3.bf16.msra.mxu1 %v6191_v61  ;;  %v7169_v59 = vld [vmem:[%s8101_s4 + $0x1c0] sm:$0xff]   ;;  %v7180_v62 = vor.u32 %v7125_v19, %v8166_v47  ;;  %v7188_v34 = vor.u32 %v7122_v40, %v8167_v2  ;;  %v6196_v19 = vld [vmem:[%s8101_s4 + $0xb0] sm:$0xff]   ;;  %v1484_v47 = vor.u32 %v1483_v49, %v1480_v11  ;;  %v3404_v2 = vrot.slane %v8168_v52, 1 }
 0x15d   : > { %5404 = vmatmul.mubr.bf16.gmra.mrb[44].mxu0 %v1440_v50  ;;  %5653 = vmatprep.subr.bf16.mxu1 %v6195_v4  ;;  %v7174_v61 = vor.u32 %v6862_v54, %v8165_v21  ;;  %v1458_v54 = vsel %vm1378_vm4, %v1448_v10, %v1457_v46  ;;  %v3009_v21 = vor.u32 %v3005_v22, %v7133_v25  ;;  %v7199_v40 = vld [vmem:[#allocation2 + $0x30] sm:$0xff]  ;;  %v6223_v52 = vld [vmem:[#allocation2] sm:$0x80]  ;;  %v8170_v49 = vrot.slane %v6822_v20, 1 }
 0x15e   : > { %5407 = vmatprep.mubr.bf16.mxu0 %v1449_v1  ;;  %5440 = vmatpush3.bf16.msra.mxu0 %v6193_v15  ;;  %v3017_v50 = vor.u32 %v3013_v12, %v7109_v38  ;;  %v1467_v15 = vsel %vm1378_vm4, %v1457_v46, %v1466_v18  ;;  %v1475_v1 = vor.u32 %v1474_v57, %v1471_v27  ;;  %v8169_v27 = vshll.u32 %v7156_v0, 16 }
 0x15f   : > { %5441 = vmatprep.subr.bf16.mxu0 %v6194_v60  ;;  %v3025_v10 = vor.u32 %v3021_v8, %v7112_v37  ;;  %v1493_v22 = vor.u32 %v1492_v43, %v1489_v29  ;;  %v3014_v6 = vsel %vm2930_vm3, %v3009_v21, %v3013_v12  ;;  %v1812_v57 = vshrl.u32 %v6223_v52, 16 }
 0x160   : > { %5654 = vmatpush3.bf16.msra.mxu1 %v6195_v4  ;;  %v3399_v46 = vrot.slane %v8169_v27, 1  ;;  %v8134_v4 = vshrl.u32 %v7145_v63, 16  ;;  %v3022_v11 = vsel %vm2930_vm3, %v3017_v50, %v3021_v8  ;;  %v8171_v43 = vshrl.u32 %v6893_v51, 16  ;;  %v7224_v51 = vld [vmem:[#allocation2 + $0x38] sm:$0xff] }
 0x161   : > { %5691 = vmatprep.subr.bf16.mxu1 %v7169_v59  ;;  %v3030_v29 = vsel %vm2930_vm3, %v3025_v10, %v8170_v49  ;;  %v8131_v12 = vshll.u32 %v7199_v40, 16  ;;  %v1485_v8 = vsel %vm1378_vm4, %v1475_v1, %v1484_v47  ;;  %v8135_v20 = vshrl.u32 %v7156_v0, 16 }
 0x162   : > { %5442 = vmatpush3.bf16.msra.mxu0 %v6194_v60  ;;  %v3073_v55 = vor.u32 %v7013_v31, %v8171_v43  ;;  %v6197_v60 = vld [vmem:[%s8101_s4 + $0xb8] sm:$0xff]   ;;  %v3408_v7 = vor.u32 %v8134_v4, %v3404_v2  ;;  %v7227_v31 = vsel %vm1378_vm4, %v1484_v47, %v1493_v22  ;;  %v7230_v50 = vsel %vm1378_vm4, %v1493_v22, %v1502_v28  ;;  %v7327_v4 = vld [vmem:[#allocation2 + $0x70] sm:$0xff] }
 0x163   : > { %5620 = vmatmul.mubr.bf16.gmra.mrb[12].mxu1 %v3014_v6  ;;  %5443 = vmatprep.subr.bf16.mxu0 %v6196_v19  ;;  %v1476_v6 = vsel %vm1378_vm4, %v1466_v18, %v1475_v1  ;;  %v3412_v21 = vrot.slane %v8133_v33, 1  ;;  %v3414_v18 = vshrl.u32 %v7183_v41, 16  ;;  %v7235_v1 = vld [vmem:[#allocation2 + $0x40] sm:$0xff]  ;;  %v7239_v10 = vsel %vm1378_vm4, %v1502_v28, %v7011_v17 }
 0x164   : > { %5623 = vmatprep.mubr.bf16.mxu1 %v3022_v11  ;;  %v1814_v47 = vrot.slane %v1812_v57, 7  ;;  %v8172_v22 = vrot.slane %v6787_v3, 7  ;;  %v7248_v52 = vsel %vm2930_vm3, %v3073_v55, %v7106_v39  ;;  %v8173_v28 = vrot.slane %v6850_v14, 7  ;;  %v7273_v55 = vld [vmem:[#allocation2 + $0x48] sm:$0xff] }
 0x165   : > { %5408 = vmatmul.mubr.bf16.gmra.mrb[48].mxu0 %v1458_v54  ;;  %v3400_v54 = vor.u32 %v3399_v46, %v8135_v20  ;;  %v7261_v46 = vld [vmem:[%s8101_s4 + $0xc0] sm:$0xff]   ;;  %v7267_v39 = vsel %vm2930_vm3, %v3408_v7, %v3412_v21  ;;  %v8130_v11 = vshll.u32 %v7235_v1, 16  ;;  %v3416_v49 = vor.u32 %v3414_v18, %v3412_v21  ;;  %v7311_v7 = vld [vmem:[#allocation2 + $0x68] sm:$0xff] }
 0x166   : > { %5411 = vmatprep.mubr.bf16.mxu0 %v1467_v15  ;;  %5444 = vmatpush3.bf16.msra.mxu0 %v6196_v19  ;;  %v1816_v27 = vor.u32 %v8172_v22, %v6791_v16  ;;  %v3420_v15 = vrot.slane %v8131_v12, 1  ;;  %v7255_v17 = vor.u32 %v6814_v35, %v8173_v28  ;;  %v8129_v19 = vshll.u32 %v7224_v51, 16  ;;  %v7275_v22 = vld [vmem:[#allocation2 + $0x90] sm:$0xff]  ;;  %v7367_v20 = vld [vmem:[#allocation2 + $0x88] sm:$0xff] }
 0x167   : > { %5445 = vmatprep.subr.bf16.mxu0 %v6197_v60  ;;  %v7264_v57 = vsel %vm2930_vm3, %v3400_v54, %v3404_v2  ;;  %v7270_v43 = vrot.slane %v3414_v18, 1  ;;  %v8132_v35 = vshrl.u32 %v7199_v40, 16  ;;  %v7308_v2 = vshrl.u32 %v7275_v22, 16 }
 0x168   : > { %v7278_v28 = vsel %vm1810_vm5, %v1814_v47, %v1816_v27  ;;  %v7283_v21 = vsel %vm2930_vm3, %v3416_v49, %v3420_v15  ;;  %v7291_v54 = vrot.slane %v8129_v19, 1  ;;  %v7295_v47 = vld [vmem:[#allocation2 + $0x58] sm:$0xff]  ;;  %v7305_v49 = vld [vmem:[#allocation2 + $0x60] sm:$0xff]  ;;  %v8177_v19 = vrot.slane %v6808_v24, 7 }
 0x169   : > { %v7287_v18 = vor.u32 %v8132_v35, %v3420_v15  ;;  %v1869_v12 = vrot.slane %v7308_v2, 7  ;;  %v8179_v27 = vrot.slane %v6865_v56, 7  ;;  %v3862_v24 = vrot.slane %v7183_v41, 1 }
 0x16a   : > { %5446 = vmatpush3.bf16.msra.mxu0 %v6197_v60  ;;  %v7293_v60 = vld [vmem:[#allocation2 + $0x50] sm:$0xff]  ;;  %v7342_v33 = vsel %vm1810_vm5, %v8177_v19, %v6888_v9  ;;  %v3864_v19 = vrot.slane %v7199_v40, 1  ;;  %v3868_v35 = vrot.slane %v7235_v1, 1 }
 0x16b   : > { %5624 = vmatmul.mubr.bf16.gmra.mrb[16].mxu1 %v3030_v29  ;;  %5483 = vmatprep.subr.bf16.mxu0 %v7261_v46  ;;  %v7301_v29 = vrot.slane %v8130_v11, 1 }
 0x16c   : > { %5627 = vmatprep.mubr.bf16.mxu1 %v6985_v53  ;;  %v8174_v53 = vrot.slane %v6811_v58, 7  ;;  %v8178_v58 = vor.u32 %v6871_v36, %v6868_v5  ;;  %v7359_v36 = vld [vmem:[#allocation2 + $0x80] sm:$0xff] }
 0x16d   : > { %5412 = vmatmul.mubr.bf16.gmra.mrb[52].mxu0 %v1476_v6  ;;  %v7323_v6 = vld [vmem:[#allocation2 + $0x10] sm:$0xff] }
 0x16e   : > { %v7317_v11 = vsel %vm1810_vm5, %v8174_v53, %v6830_v13  ;;  %5415 = vmatprep.mubr.bf16.mxu0 %v1485_v8  ;;  %8176 = vst [vmem:[#allocation25_spill] sm:$0xff] %v7323_v6  ;;  %v7330_v13 = vld [vmem:[#allocation2 + $0x78] sm:$0xff]  ;;  %v7333_v8 = vshll.u32 %v7275_v22, 16  ;;  %v7350_v15 = vsel %vm1810_vm5, %v8179_v27, %v8178_v58  ;;  %v2194_v53 = vshrl.u32 %v7323_v6, 16 }
 0x16f   : > { %8175 = vst [vmem:[#allocation24_spill] sm:$0xff] %v7317_v11  ;;  %8180 = vst [vmem:[#allocation26_spill] sm:$0xff] %v7350_v15  ;;  %v8181_v27 = vshrl.u32 %v7156_v0, 16  ;;  %v7385_v6 = vsel %vm3858_vm6, %v3862_v24, %v3864_v19 }
 0x170   : > { %v1872_v11 = vor.u32 %v7333_v8, %v1869_v12  ;;  %v7361_v56 = vrot.slane %v2194_v53, 7  ;;  %v3866_v53 = vrot.slane %v7224_v51, 1 }
 0x171   : > { %v2204_v58 = vrot.slane %v8181_v27, 7 }
 0x172   : > { %v7371_v12 = vsel %vm1810_vm5, %v6868_v5, %v1872_v11  ;;  %v8185_v11 = vshll.u32 %v7156_v0, 16  ;;  %v7397_v27 = vsel %vm3858_vm6, %v3864_v19, %v3866_v53  ;;  %v7400_v15 = vsel %vm3858_vm6, %v3866_v53, %v3868_v35 }
 0x173   : > { %5628 = vmatmul.mubr.bf16.gmra.mrb[20].mxu1 %v7001_v44  ;;  %8182 = vst [vmem:[#allocation27_spill] sm:$0xff] %v7371_v12  ;;  %v8183_v44 = vrot.slane %v7145_v63, 1  ;;  %v3874_v19 = vrot.slane %v7295_v47, 1  ;;  %v8192_v53 = vrot.slane %v7133_v25, 7 }
 0x174   : > { %5631 = vmatprep.mubr.bf16.mxu1 %v7009_v45  ;;  %v7382_v45 = vld [vmem:[#allocation2 + $0x98] sm:$0xff]  ;;  %v2207_v12 = vor.u32 %v8185_v11, %v2204_v58  ;;  %v3880_v11 = vrot.slane %v7327_v4, 1 }
 0x175   : > { %v7376_v9 = vsel %vm3858_vm6, %v8183_v44, %v3862_v24  ;;  %5416 = vmatmul.mubr.bf16.gmra.mrb[56].mxu0 %v7227_v31  ;;  %v7391_v44 = vsel %vm1810_vm5, %v2204_v58, %v7174_v61  ;;  %v3870_v58 = vrot.slane %v7273_v55, 1  ;;  %v3876_v31 = vrot.slane %v7305_v49, 1 }
 0x176   : > { %8184 = vst [vmem:[#allocation28_spill] sm:$0xff] %v7376_v9  ;;  %8186 = vst [vmem:[#allocation29_spill] sm:$0xff] %v7391_v44  ;;  %5419 = vmatprep.mubr.bf16.mxu0 %v7230_v50  ;;  %v7405_v0 = vsel %vm1810_vm5, %v7361_v56, %v2207_v12  ;;  %v3872_v50 = vrot.slane %v7293_v60, 1  ;;  %v3878_v9 = vrot.slane %v7311_v7, 1 }
 0x177   : > { %8187 = vst [vmem:[#allocation30_spill] sm:$0xff] %v7405_v0  ;;  %v7415_v24 = vsel %vm3858_vm6, %v3868_v35, %v3870_v58  ;;  %v7424_v0 = vsel %vm3858_vm6, %v3874_v19, %v3876_v31  ;;  %v7433_v35 = vsel %vm1810_vm5, %v8192_v53, %v7188_v34  ;;  %v8196_v34 = vrot.slane %v7112_v37, 7 }
 0x178   : > { %8188 = vst [vmem:[#allocation31_spill] sm:$0xff] %v7415_v24  ;;  %v7418_v12 = vsel %vm3858_vm6, %v3870_v58, %v3872_v50  ;;  %v7421_v44 = vsel %vm3858_vm6, %v3872_v50, %v3874_v19  ;;  %8191 = vst [vmem:[#allocation34_spill] sm:$0xff] %v7424_v0  ;;  %v3882_v58 = vrot.slane %v7330_v13, 1  ;;  %v3884_v50 = vrot.slane %v7359_v36, 1 }
 0x179   : > { %8189 = vst [vmem:[#allocation32_spill] sm:$0xff] %v7418_v12  ;;  %8190 = vst [vmem:[#allocation33_spill] sm:$0xff] %v7421_v44  ;;  %v7439_v19 = vsel %vm3858_vm6, %v3876_v31, %v3878_v9  ;;  %v7442_v0 = vsel %vm3858_vm6, %v3878_v9, %v3880_v11  ;;  %v7454_v53 = vsel %vm1810_vm5, %v8196_v34, %v6838_v30  ;;  %v3890_v37 = vrot.slane %v7382_v45, 1  ;;  %v8199_v30 = vld [vmem:[#allocation3_spill] sm:$0xff] }
 0x17a   : > { %8193 = vst [vmem:[#allocation35_spill] sm:$0xff] %v7439_v19  ;;  %8194 = vst [vmem:[#allocation36_spill] sm:$0xff] %v7442_v0  ;;  %v7460_v31 = vsel %vm3858_vm6, %v3880_v11, %v3882_v58  ;;  %v7463_v9 = vsel %vm3858_vm6, %v3882_v58, %v3884_v50  ;;  %v8202_v11 = vld [vmem:[#allocation10_spill] sm:$0xff]  ;;  %v8213_v0 = vshll.u32 %v7199_v40, 16 }
 0x17b   : > { %5632 = vmatmul.mubr.bf16.gmra.mrb[24].mxu1 %v7017_v42  ;;  %v8195_v42 = vrot.slane %v7109_v38, 7  ;;  %8197 = vst [vmem:[#allocation37_spill] sm:$0xff] %v7460_v31  ;;  %8198 = vst [vmem:[#allocation38_spill] sm:$0xff] %v7463_v9  ;;  %v3886_v38 = vrot.slane %v7367_v20, 1  ;;  %v7479_v58 = vsel %vm1810_vm5, %v6868_v5, %v8202_v11  ;;  %v8208_v11 = vld [vmem:[#allocation9_spill] sm:$0xff] }
 0x17c   : > { %5635 = vmatprep.mubr.bf16.mxu1 %v7036_v23  ;;  %v7457_v23 = vld [vmem:[#allocation2 + $0x18] sm:$0xfe]  ;;  %8203 = vst [vmem:[#allocation10_spill] sm:$0xff] %v7479_v58  ;;  %v8209_v58 = vld [vmem:[#allocation7_spill] sm:$0xff]  ;;  %v4211_v19 = vrot.slane %v8213_v0, 2 }
 0x17d   : > { %v7448_v44 = vsel %vm1810_vm5, %v8195_v42, %v7180_v62  ;;  %5420 = vmatmul.mubr.bf16.gmra.mrb[60].mxu0 %v7239_v10  ;;  %v3888_v62 = vrot.slane %v7275_v22, 1  ;;  %v8140_v42 = vrot.slane %v8199_v30, 1  ;;  %v7471_v10 = vsel %vm3858_vm6, %v3884_v50, %v3886_v38 }
 0x17e   : > { %5423 = vmatprep.mubr.bf16.mxu0 %v7032_v48  ;;  %8200 = vst [vmem:[#allocation3_spill] sm:$0xff] %v7471_v10  ;;  %v4195_v22 = vshrl.u32 %v7457_v23, 16  ;;  %v4198_v50 = vshll.u32 %v7457_v23, 16  ;;  %v8207_v10 = vshll.u32 %v7145_v63, 16 }
 0x17f   : > { %v7474_v34 = vsel %vm3858_vm6, %v3886_v38, %v3888_v62  ;;  %v7482_v9 = vsel %vm3858_vm6, %v3888_v62, %v3890_v37  ;;  %v7487_v48 = vsel %vm3858_vm6, %v3890_v37, %v8140_v42  ;;  %v8206_v38 = vshrl.u32 %v7145_v63, 16 }
 0x180   : > { %8201 = vst [vmem:[#allocation39_spill] sm:$0xff] %v7474_v34  ;;  %8204 = vst [vmem:[#allocation40_spill] sm:$0xff] %v7482_v9  ;;  %v4203_v5 = vrot.slane %v8207_v10, 2  ;;  %v7498_v62 = vsel %vm1810_vm5, %v8209_v58, %v8208_v11  ;;  %v4197_v9 = vrot.slane %v4195_v22, 1  ;;  %v8211_v37 = vshll.u32 %v7183_v41, 16 }
 0x181   : > { %8205 = vst [vmem:[#allocation41_spill] sm:$0xff] %v7487_v48  ;;  %v4202_v34 = vrot.slane %v8206_v38, 1  ;;  %8210 = vst [vmem:[#allocation9_spill] sm:$0xff] %v7498_v62  ;;  %v8212_v48 = vshrl.u32 %v7199_v40, 16  ;;  %v4200_v38 = vrot.slane %v4198_v50, 2  ;;  %v8214_v10 = vshrl.u32 %v7224_v51, 16 }
 0x182   : > { %v4207_v42 = vrot.slane %v8211_v37, 2  ;;  %v8215_v58 = vshll.u32 %v7224_v51, 16  ;;  %v8217_v40 = vshll.u32 %v7235_v1, 16 }
 0x183   : > { %v4210_v31 = vrot.slane %v8212_v48, 1  ;;  %5636 = vmatmul.mubr.bf16.gmra.mrb[28].mxu1 %v7248_v52  ;;  %v4204_v12 = vor.u32 %v4203_v5, %v4202_v34  ;;  %v4214_v24 = vrot.slane %v8214_v10, 1  ;;  %v8216_v48 = vshrl.u32 %v7235_v1, 16  ;;  %v8218_v52 = vld [vmem:[#allocation16_spill] sm:$0xff] }
 0x184   : > { %v4215_v11 = vrot.slane %v8215_v58, 2  ;;  %5655 = vmatprep.mubr.bf16.mxu1 %v7264_v57  ;;  %v4208_v41 = vor.u32 %v4207_v42, %v7270_v43  ;;  %v4219_v0 = vrot.slane %v8217_v40, 2  ;;  %v4201_v34 = vor.u32 %v4200_v38, %v4197_v9  ;;  %v8221_v57 = vld [vmem:[#allocation19_spill] sm:$0xff] }
 0x185   : > { %v4212_v22 = vor.u32 %v4211_v19, %v4210_v31  ;;  %v4218_v37 = vrot.slane %v8216_v48, 1  ;;  %5424 = vmatmul.mubr.bf16.gmra.mrb[64].mxu0 %v8218_v52  ;;  %v8219_v5 = vshrl.u32 %v7273_v55, 16  ;;  %v8220_v58 = vshll.u32 %v7273_v55, 16 }
 0x186   : > { %v4216_v50 = vor.u32 %v4215_v11, %v4214_v24  ;;  %5427 = vmatprep.mubr.bf16.mxu0 %v8221_v57  ;;  %v7524_v43 = vsel %vm4193_vm7, %v4204_v12, %v4208_v41  ;;  %v8223_v42 = vshrl.u32 %v7293_v60, 16  ;;  %v7532_v24 = vsel %vm4193_vm7, %v4201_v34, %v4204_v12 }
 0x187   : > { %v4222_v10 = vrot.slane %v8219_v5, 1  ;;  %v4223_v62 = vrot.slane %v8220_v58, 2  ;;  %v7527_v19 = vsel %vm4193_vm7, %v4208_v41, %v4212_v22  ;;  %v4220_v31 = vor.u32 %v4219_v0, %v4218_v37 }
 0x188   : > { %8222 = vst [vmem:[#allocation7_spill] sm:$0xff] %v7527_v19  ;;  %v4226_v48 = vrot.slane %v8223_v42, 1  ;;  %v7535_v9 = vsel %vm4193_vm7, %v4212_v22, %v4216_v50  ;;  %v8225_v11 = vshll.u32 %v7293_v60, 16  ;;  %v8227_v41 = vshrl.u32 %v7295_v47, 16  ;;  %v6199_v22 = vld [vmem:[%s8101_s4 + $0x1c8] sm:$0xff]  }
 0x189   : > { %8224 = vst [vmem:[#allocation16_spill] sm:$0xff] %v7535_v9  ;;  %v4224_v38 = vor.u32 %v4223_v62, %v4222_v10  ;;  %v7540_v52 = vsel %vm4193_vm7, %v4216_v50, %v4220_v31  ;;  %v8228_v37 = vshll.u32 %v7295_v47, 16  ;;  %v8229_v58 = vshrl.u32 %v7305_v49, 16 }
 0x18a   : > { %v4227_v40 = vrot.slane %v8225_v11, 2  ;;  %8226 = vst [vmem:[#allocation19_spill] sm:$0xff] %v7540_v52  ;;  %v4230_v5 = vrot.slane %v8227_v41, 1  ;;  %v8230_v50 = vshll.u32 %v7305_v49, 16  ;;  %v8231_v57 = vshrl.u32 %v7311_v7, 16 }
 0x18b   : > { %v4231_v0 = vrot.slane %v8228_v37, 2  ;;  %v4234_v12 = vrot.slane %v8229_v58, 1  ;;  %v7552_v62 = vsel %vm4193_vm7, %v4220_v31, %v4224_v38  ;;  %v8232_v41 = vshll.u32 %v7311_v7, 16  ;;  %5656 = vmatmul.mubr.bf16.vlgmr.msra.gmra.mrb[32].mxu1 %v7267_v39 }
 0x18c   : > { %v4228_v34 = vor.u32 %v4227_v40, %v4226_v48  ;;  %v4235_v10 = vrot.slane %v8230_v50, 2  ;;  %v4238_v42 = vrot.slane %v8231_v57, 1  ;;  %v8233_v58 = vshrl.u32 %v7327_v4, 16  ;;  %5692 = vmatpush3.bf16.msra.mxu1 %v7169_v59  ;;  %5659 = vmatprep.mubr.bf16.mxu1 %v7283_v21 }
 0x18d   : > { %v4232_v11 = vor.u32 %v4231_v0, %v4230_v5  ;;  %v4239_v37 = vrot.slane %v8232_v41, 2  ;;  %v8234_v9 = vshll.u32 %v7327_v4, 16  ;;  %v8235_v40 = vshrl.u32 %v7330_v13, 16  ;;  %5428 = vmatmul.mubr.bf16.gmra.mrb[68].mxu0 %v7088_v32  ;;  %5693 = vmatprep.subr.bf16.mxu1 %v6199_v22 }
 0x18e   : > { %v4242_v52 = vrot.slane %v8233_v58, 1  ;;  %v7566_v31 = vsel %vm4193_vm7, %v4224_v38, %v4228_v34  ;;  %v4236_v48 = vor.u32 %v4235_v10, %v4234_v12  ;;  %v8236_v5 = vshll.u32 %v7330_v13, 16  ;;  %v6200_v12 = vld [vmem:[%s8101_s4 + $0x1d0] sm:$0xff]   ;;  %5447 = vmatprep.mubr.bf16.mxu0 %v7278_v28 }
 0x18f   : > { %v4243_v19 = vrot.slane %v8234_v9, 2  ;;  %v4246_v50 = vrot.slane %v8235_v40, 1  ;;  %v7575_v57 = vsel %vm4193_vm7, %v4228_v34, %v4232_v11  ;;  %v4240_v9 = vor.u32 %v4239_v37, %v4238_v42 }
 0x190   : > { %v4247_v0 = vrot.slane %v8236_v5, 2  ;;  %v8237_v39 = vshrl.u32 %v7359_v36, 16  ;;  %v7584_v10 = vsel %vm4193_vm7, %v4232_v11, %v4236_v48  ;;  %v8238_v21 = vshll.u32 %v7359_v36, 16  ;;  %5694 = vmatpush3.bf16.msra.mxu1 %v6199_v22  ;;  %v6201_v22 = vld [vmem:[%s8101_s4 + $0x1d8] sm:$0xff]  }
 0x191   : > { %v4244_v41 = vor.u32 %v4243_v19, %v4242_v52  ;;  %v8239_v42 = vshrl.u32 %v7367_v20, 16  ;;  %v7592_v52 = vsel %vm4193_vm7, %v4236_v48, %v4240_v9  ;;  %v8241_v37 = vshll.u32 %v7367_v20, 16  ;;  %5695 = vmatprep.subr.bf16.mxu1 %v6200_v12 }
 0x192   : > { %v4250_v38 = vrot.slane %v8237_v39, 1  ;;  %v4248_v59 = vor.u32 %v4247_v0, %v4246_v50  ;;  %v4251_v34 = vrot.slane %v8238_v21, 2  ;;  %v4258_v11 = vrot.slane %v7308_v2, 1 }
 0x193   : > { %v4254_v19 = vrot.slane %v8239_v42, 1  ;;  %v7595_v32 = vsel %vm4193_vm7, %v4240_v9, %v4244_v41  ;;  %v4255_v58 = vrot.slane %v8241_v37, 2  ;;  %v4259_v5 = vrot.slane %v7333_v8, 2 }
 0x194   : > { %8240 = vst [vmem:[#allocation42_spill] sm:$0xff] %v7595_v32  ;;  %v7601_v40 = vsel %vm4193_vm7, %v4244_v41, %v4248_v59  ;;  %v4252_v50 = vor.u32 %v4251_v34, %v4250_v38  ;;  %v8242_v0 = vshrl.u32 %v7382_v45, 16  ;;  %v8243_v39 = vshll.u32 %v7382_v45, 16  ;;  %v8245_v32 = vld [vmem:[#allocation4_spill] sm:$0xff]  ;;  %5696 = vmatpush3.bf16.msra.mxu1 %v6200_v12  ;;  %v7658_v12 = vld [vmem:[#allocation2 + $0xa8] sm:$0x1] }
 0x195   : > { %v4256_v48 = vor.u32 %v4255_v58, %v4254_v19  ;;  %v4266_v21 = vrot.slane %v6787_v3, 1  ;;  %v4267_v42 = vrot.slane %v6791_v16, 2  ;;  %v8244_v37 = vrot.slane %v6911_v26, 7  ;;  %5697 = vmatprep.subr.bf16.mxu1 %v6201_v22 }
 0x196   : > { %v4262_v28 = vrot.slane %v8242_v0, 1  ;;  %v4263_v9 = vrot.slane %v8243_v39, 2  ;;  %v8246_v38 = vshrl.u32 %v7224_v51, 16  ;;  %v7620_v19 = vsel %vm4193_vm7, %v4248_v59, %v4252_v50  ;;  %v6205_v59 = vld [vmem:[%s8101_s4 + $0xc8] sm:$0xff]  }
 0x197   : > { %v1822_v41 = vor.u32 %v8245_v32, %v8244_v37  ;;  %v4260_v58 = vor.u32 %v4259_v5, %v4258_v11  ;;  %v3429_v0 = vsel %vm2930_vm3, %v7287_v18, %v7291_v54  ;;  %v7626_v39 = vsel %vm4193_vm7, %v4252_v50, %v4256_v48 }
 0x198   : > { %v3432_v34 = vor.u32 %v8246_v38, %v7291_v54  ;;  %v4264_v32 = vor.u32 %v4263_v9, %v4262_v28  ;;  %v7628_v37 = vor.u32 %v4267_v42, %v4266_v21  ;;  %5660 = vmatmul.mubr.bf16.gmra.mrb[0].mxu1 %v3429_v0  ;;  %v8247_v18 = vrot.slane %v6787_v3, 7  ;;  %v8249_v9 = vld [vmem:[#allocation11_spill] sm:$0xff] }
 0x199   : > { %v7636_v11 = vsel %vm4193_vm7, %v4256_v48, %v4260_v58  ;;  %v8248_v28 = vrot.slane %v6850_v14, 7  ;;  %v1827_v21 = vrot.slane %v8249_v9, 7  ;;  %v8250_v42 = vshll.u32 %v7273_v55, 16  ;;  %5698 = vmatpush3.bf16.msra.mxu1 %v6201_v22 }
 0x19a   : > { %v3437_v51 = vsel %vm2930_vm3, %v3432_v34, %v7301_v29  ;;  %v1820_v54 = vsel %vm1810_vm5, %v8247_v18, %v7255_v17  ;;  %v7643_v50 = vsel %vm4193_vm7, %v4260_v58, %v4264_v32  ;;  %v7647_v5 = vsel %vm4193_vm7, %v4264_v32, %v7628_v37  ;;  %v6202_v17 = vld [vmem:[%s8101_s4 + $0x1e0] sm:$0xff]   ;;  %v6206_v32 = vld [vmem:[%s8101_s4 + $0xd0] sm:$0xff]  }
 0x19b   : > { %5663 = vmatprep.mubr.bf16.mxu1 %v3437_v51  ;;  %5448 = vmatmul.mubr.bf16.vlgmr.msra.gmra.mrb[36].mxu0 %v1820_v54  ;;  %v1823_v48 = vsel %vm1810_vm5, %v8248_v28, %v1822_v41  ;;  %v3444_v38 = vrot.slane %v8250_v42, 1  ;;  %v8251_v34 = vshrl.u32 %v7235_v1, 16  ;;  %v3894_v14 = vrot.slane %v7658_v12, 1  ;;  %v8254_v1 = vld [vmem:[#allocation6_spill] sm:$0xff] }
 0x19c   : > { %5451 = vmatprep.mubr.bf16.mxu0 %v1823_v48  ;;  %5484 = vmatpush3.bf16.msra.mxu0 %v7261_v46  ;;  %v8252_v41 = vshll.u32 %v7293_v60, 16  ;;  %v8253_v51 = vrot.slane %v8199_v30, 1  ;;  %v8255_v46 = vshrl.u32 %v7273_v55, 16  ;;  %v6204_v28 = vld [vmem:[%s8101_s4 + $0x1e8] sm:$0xff]   ;;  %v6208_v30 = vld [vmem:[%s8101_s4 + $0xd8] sm:$0xff]   ;;  %v8256_v55 = vrot.slane %v6911_v26, 7 }
 0x19d   : > { %v3440_v58 = vor.u32 %v8251_v34, %v7301_v29  ;;  %5485 = vmatprep.subr.bf16.mxu0 %v6205_v59  ;;  %v1828_v29 = vor.u32 %v8254_v1, %v1827_v21  ;;  %5699 = vmatprep.subr.bf16.mxu1 %v6202_v17  ;;  %v8257_v42 = vld [vmem:[#allocation14_spill] sm:$0xff]  ;;  %v6207_v26 = vld [vmem:[%s8101_s4 + $0x1f0] sm:$0xff]  }
 0x19e   : > { %v3452_v0 = vrot.slane %v8252_v41, 1  ;;  %v7673_v18 = vsel %vm3858_vm6, %v8253_v51, %v3894_v14  ;;  %v3448_v54 = vor.u32 %v8255_v46, %v3444_v38  ;;  %v1826_v9 = vsel %vm1810_vm5, %v8256_v55, %v7174_v61  ;;  %5700 = vmatpush3.bf16.msra.mxu1 %v6202_v17  ;;  %v8260_v14 = vld [vmem:[#allocation12_spill] sm:$0xff]  ;;  %v8265_v55 = vld [vmem:[#allocation13_spill] sm:$0xff] }
 0x19f   : > { %v3445_v48 = vsel %vm2930_vm3, %v3440_v58, %v3444_v38  ;;  %v1830_v34 = vrot.slane %v8257_v42, 7  ;;  %v8258_v38 = vld [vmem:[#allocation5_spill] sm:$0xff]  ;;  %v1833_v41 = vrot.slane %v8260_v14, 7  ;;  %v8261_v51 = vshll.u32 %v7295_v47, 16  ;;  %5701 = vmatprep.subr.bf16.mxu1 %v6204_v28 }
 0x1a0   : > { %5486 = vmatpush3.bf16.msra.mxu0 %v6205_v59  ;;  %5664 = vmatmul.mubr.bf16.gmra.mrb[4].mxu1 %v3445_v48  ;;  %v3453_v22 = vsel %vm2930_vm3, %v3448_v54, %v3452_v0  ;;  %v8259_v59 = vrot.slane %v8258_v38, 7  ;;  %v8262_v61 = vshrl.u32 %v7293_v60, 16  ;;  %v8263_v46 = vshll.u32 %v7305_v49, 16  ;;  %v6209_v54 = vld [vmem:[%s8101_s4 + $0xe0] sm:$0xff]   ;;  %v8264_v48 = vld [vmem:[#allocation8_spill] sm:$0xff] }
 0x1a1   : > { %5487 = vmatprep.subr.bf16.mxu0 %v6206_v32  ;;  %5667 = vmatprep.mubr.bf16.mxu1 %v3453_v22  ;;  %v3460_v1 = vrot.slane %v8261_v51, 1  ;;  %v1831_v22 = vor.u32 %v8264_v48, %v1830_v34  ;;  %v8266_v42 = vshrl.u32 %v7295_v47, 16  ;;  %v6211_v60 = vld [vmem:[%s8101_s4 + $0x1f8] sm:$0xff]   ;;  %v8267_v47 = vld [vmem:[#allocation17_spill] sm:$0xff] }
 0x1a2   : > { %v7694_v58 = vsel %vm1810_vm5, %v8259_v59, %v1828_v29  ;;  %v3456_v17 = vor.u32 %v8262_v61, %v3452_v0  ;;  %v3468_v29 = vrot.slane %v8263_v46, 1  ;;  %5702 = vmatpush3.bf16.msra.mxu1 %v6204_v28  ;;  %v6210_v28 = vld [vmem:[%s8101_s4 + $0xe8] sm:$0xff]   ;;  %v1836_v14 = vrot.slane %v8267_v47, 7 }
 0x1a3   : > { %5452 = vmatmul.mubr.bf16.gmra.mrb[40].mxu0 %v1826_v9  ;;  %v1834_v9 = vor.u32 %v8265_v55, %v1833_v41  ;;  %v3464_v38 = vor.u32 %v8266_v42, %v3460_v1  ;;  %5703 = vmatprep.subr.bf16.mxu1 %v6207_v26  ;;  %v7723_v59 = vsel %vm1810_vm5, %v1827_v21, %v1831_v22  ;;  %v8269_v61 = vshll.u32 %v7311_v7, 16  ;;  %v7736_v21 = vld [vmem:[%s8101_s4 + $0x200] sm:$0xff]   ;;  %v6212_v22 = vld [vmem:[%s8101_s4 + $0xf0] sm:$0xff]   ;;  %v8273_v42 = vld [vmem:[#allocation18_spill] sm:$0xff] }
 0x1a4   : > { %5455 = vmatprep.mubr.bf16.mxu0 %v7694_v58  ;;  %5488 = vmatpush3.bf16.msra.mxu0 %v6206_v32  ;;  %v3461_v0 = vsel %vm2930_vm3, %v3456_v17, %v3460_v1  ;;  %v8272_v55 = vld [vmem:[#allocation15_spill] sm:$0xff]  ;;  %v8275_v47 = vld [vmem:[#allocation22_spill] sm:$0xff] }
 0x1a5   : > { %5489 = vmatprep.subr.bf16.mxu0 %v6208_v30  ;;  %v3469_v32 = vsel %vm2930_vm3, %v3464_v38, %v3468_v29  ;;  %v7728_v51 = vsel %vm1810_vm5, %v1830_v34, %v1834_v9  ;;  %v3476_v17 = vrot.slane %v8269_v61, 1  ;;  %v8271_v34 = vshll.u32 %v7327_v4, 16 }
 0x1a6   : > { %5704 = vmatpush3.bf16.msra.mxu1 %v6207_v26  ;;  %v8270_v26 = vshrl.u32 %v7305_v49, 16  ;;  %v1837_v9 = vor.u32 %v8272_v55, %v1836_v14 }
 0x1a7   : > { %5705 = vmatprep.subr.bf16.mxu1 %v6211_v60  ;;  %v3484_v48 = vrot.slane %v8271_v34, 1  ;;  %v8279_v34 = vld [vmem:[#allocation20_spill] sm:$0xff] }
 0x1a8   : > { %5490 = vmatpush3.bf16.msra.mxu0 %v6208_v30  ;;  %5668 = vmatmul.mubr.bf16.gmra.mrb[8].mxu1 %v3461_v0  ;;  %v8268_v30 = vld [vmem:[#allocation21_spill] sm:$0xff]  ;;  %v3472_v46 = vor.u32 %v8270_v26, %v3468_v29  ;;  %v8274_v0 = vshrl.u32 %v7311_v7, 16  ;;  %v1842_v7 = vrot.slane %v8275_v47, 7  ;;  %v3516_v47 = vrot.slane %v7333_v8, 1 }
 0x1a9   : > { %5491 = vmatprep.subr.bf16.mxu0 %v6209_v54  ;;  %5671 = vmatprep.mubr.bf16.mxu1 %v3469_v32  ;;  %v1839_v1 = vrot.slane %v8268_v30, 7  ;;  %v8287_v8 = vshrl.u32 %v7382_v45, 16 }
 0x1aa   : > { %5706 = vmatpush3.bf16.msra.mxu1 %v6211_v60  ;;  %v3480_v32 = vor.u32 %v8274_v0, %v3476_v17  ;;  %v3477_v49 = vsel %vm2930_vm3, %v3472_v46, %v3476_v17  ;;  %v7757_v60 = vsel %vm1810_vm5, %v1833_v41, %v1837_v9  ;;  %v8277_v17 = vshrl.u32 %v7327_v4, 16 }
 0x1ab   : > { %5456 = vmatmul.mubr.bf16.gmra.mrb[44].mxu0 %v7723_v59  ;;  %v1840_v38 = vor.u32 %v8273_v42, %v1839_v1  ;;  %5743 = vmatprep.subr.bf16.mxu1 %v7736_v21  ;;  %v8278_v41 = vshll.u32 %v7359_v36, 16  ;;  %v1843_v55 = vor.u32 %v8279_v34, %v1842_v7  ;;  %v8280_v9 = vrot.slane %v7133_v25, 7  ;;  %v8281_v42 = vld [vmem:[#allocation23_spill] sm:$0xff] }
 0x1ac   : > { %5459 = vmatprep.mubr.bf16.mxu0 %v7728_v51  ;;  %5492 = vmatpush3.bf16.msra.mxu0 %v6209_v54  ;;  %v3485_v29 = vsel %vm2930_vm3, %v3480_v32, %v3484_v48  ;;  %v6213_v54 = vld [vmem:[%s8101_s4 + $0xf8] sm:$0xff]   ;;  %v3488_v26 = vor.u32 %v8277_v17, %v3484_v48  ;;  %v6224_v48 = vld [vmem:[%s8101_s4 + $0x100] sm:$0xff]  }
 0x1ad   : > { %5493 = vmatprep.subr.bf16.mxu0 %v6210_v28  ;;  %v7762_v30 = vsel %vm1810_vm5, %v1836_v14, %v1840_v38  ;;  %v3500_v46 = vrot.slane %v8278_v41, 1  ;;  %v1846_v14 = vor.u32 %v8281_v42, %v8280_v9  ;;  %v8282_v38 = vshrl.u32 %v7330_v13, 16 }
 0x1af   : > { %v7787_v25 = vsel %vm1810_vm5, %v1842_v7, %v1846_v14  ;;  %v8286_v7 = vshll.u32 %v7382_v45, 16  ;;  %v8288_v14 = vld [vmem:[#allocation24_spill] sm:$0xff]  ;;  %v3859_v45 = vrot.slane %v7457_v23, 1  ;;  %v6215_v23 = vld [vmem:[%s8101_s4 + $0x208] sm:$0xff]  }
 0x1b0   : > { %5494 = vmatpush3.bf16.msra.mxu0 %v6210_v28  ;;  %5672 = vmatmul.mubr.bf16.gmra.mrb[12].mxu1 %v3477_v49  ;;  %v8276_v28 = vshll.u32 %v7330_v13, 16  ;;  %v8283_v13 = vshll.u32 %v7367_v20, 16 }
 0x1b1   : > { %5495 = vmatprep.subr.bf16.mxu0 %v6212_v22  ;;  %5675 = vmatprep.mubr.bf16.mxu1 %v3485_v29  ;;  %v8284_v29 = vshrl.u32 %v7359_v36, 16  ;;  %v3520_v36 = vor.u32 %v7308_v2, %v3516_v47 }
 0x1b2   : > { %v3492_v61 = vrot.slane %v8276_v28, 1  ;;  %v3508_v49 = vrot.slane %v8283_v13, 1  ;;  %v8285_v28 = vshrl.u32 %v7367_v20, 16  ;;  %v3532_v20 = vrot.slane %v6791_v16, 1  ;;  %v2153_v16 = vld [vmem:[#allocation2 + $0x8] sm:$0x80] }
 0x1b3   : > { %5460 = vmatmul.mubr.bf16.gmra.mrb[48].mxu0 %v7757_v60 }
 0x1b4   : > { %5463 = vmatprep.mubr.bf16.mxu0 %v7762_v30  ;;  %5496 = vmatpush3.bf16.msra.mxu0 %v6212_v22  ;;  %v3496_v0 = vor.u32 %v8282_v38, %v3492_v61  ;;  %v3493_v32 = vsel %vm2930_vm3, %v3488_v26, %v3492_v61  ;;  %v7783_v22 = vsel %vm1810_vm5, %v1839_v1, %v1843_v55  ;;  %v3524_v26 = vrot.slane %v8286_v7, 1  ;;  %v6227_v7 = vld [vmem:[%s8101_s4 + $0x118] sm:$0xff]  }
 0x1b5   : > { %5497 = vmatprep.subr.bf16.mxu0 %v6213_v54  ;;  %v3512_v1 = vor.u32 %v8285_v28, %v3508_v49  ;;  %v3536_v9 = vor.u32 %v3532_v20, %v6787_v3  ;;  %v8290_v3 = vld [vmem:[#allocation26_spill] sm:$0xff]  ;;  %v8295_v28 = vld [vmem:[#allocation29_spill] sm:$0xff] }
 0x1b6   : > { %v3501_v4 = vsel %vm2930_vm3, %v3496_v0, %v3500_v46  ;;  %v3528_v41 = vor.u32 %v8287_v8, %v3524_v26  ;;  %v3525_v34 = vsel %vm2930_vm3, %v3520_v36, %v3524_v26  ;;  %v2190_v0 = vshrl.u32 %v2153_v16, 16  ;;  %v6221_v26 = vld [vmem:[%s8101_s4 + $0x238] sm:$0xff]   ;;  %v6228_v36 = vld [vmem:[%s8101_s4 + $0x120] sm:$0xff]   ;;  %v6229_v8 = vld [vmem:[%s8101_s4 + $0x128] sm:$0xff]  }
 0x1b7   : > { %v3517_v17 = vsel %vm2930_vm3, %v3512_v1, %v3516_v47  ;;  %v6216_v47 = vld [vmem:[%s8101_s4 + $0x210] sm:$0xff]   ;;  %v6225_v1 = vld [vmem:[%s8101_s4 + $0x108] sm:$0xff]  }
 0x1b8   : > { %5498 = vmatpush3.bf16.msra.mxu0 %v6213_v54  ;;  %5676 = vmatmul.mubr.bf16.gmra.mrb[16].mxu1 %v3493_v32  ;;  %v3504_v54 = vor.u32 %v8284_v29, %v3500_v46  ;;  %v3538_v46 = vshll.u32 %v7658_v12, 16  ;;  %v3533_v55 = vsel %vm2930_vm3, %v3528_v41, %v3532_v20  ;;  %v8289_v12 = vrot.slane %v7145_v63, 1  ;;  %v8291_v32 = vld [vmem:[#allocation25_spill] sm:$0xff]  ;;  %v8292_v29 = vld [vmem:[#allocation28_spill] sm:$0xff]  ;;  %v8293_v63 = vld [vmem:[#allocation27_spill] sm:$0xff] }
 0x1b9   : > { %5535 = vmatprep.subr.bf16.mxu0 %v6224_v48  ;;  %5679 = vmatprep.mubr.bf16.mxu1 %v3501_v4  ;;  %v2197_v4 = vshll.u32 %v8291_v32, 16  ;;  %v2192_v13 = vrot.slane %v2190_v0, 7  ;;  %v8300_v41 = vld [vmem:[#allocation35_spill] sm:$0xff] }
 0x1ba   : > { %v3509_v61 = vsel %vm2930_vm3, %v3504_v54, %v3508_v49  ;;  %v3540_v42 = vrot.slane %v3538_v46, 1  ;;  %v3861_v38 = vsel %vm3858_vm6, %v3859_v45, %v8289_v12  ;;  %v6230_v20 = vld [vmem:[%s8101_s4 + $0x130] sm:$0xff]   ;;  %v8301_v46 = vld [vmem:[#allocation36_spill] sm:$0xff] }
 0x1bb   : > { %5464 = vmatmul.mubr.bf16.gmra.mrb[52].mxu0 %v7783_v22  ;;  %v2199_v49 = vor.u32 %v2197_v4, %v7361_v56  ;;  %v6217_v56 = vld [vmem:[%s8101_s4 + $0x218] sm:$0xff]  }
 0x1bc   : > { %5467 = vmatprep.mubr.bf16.mxu0 %v7787_v25  ;;  %v3541_v2 = vsel %vm2930_vm3, %v3536_v9, %v3540_v42  ;;  %v8307_v9 = vld [vmem:[#allocation41_spill] sm:$0xff]  ;;  %v8312_v42 = vld [vmem:[#allocation19_spill] sm:$0xff] }
 0x1bd   : > { %v2200_v54 = vsel %vm1810_vm5, %v2192_v13, %v2199_v49 }
 0x1c0   : > { %5680 = vmatmul.mubr.bf16.gmra.mrb[20].mxu1 %v3509_v61  ;;  %v6226_v61 = vld [vmem:[%s8101_s4 + $0x110] sm:$0xff]  }
 0x1c1   : > { %5683 = vmatprep.mubr.bf16.mxu1 %v3517_v17  ;;  %v6220_v17 = vld [vmem:[%s8101_s4 + $0x230] sm:$0xff]  }
 0x1c3   : > { %5468 = vmatmul.mubr.bf16.gmra.mrb[56].mxu0 %v7433_v35 }
 0x1c4   : > { %5471 = vmatprep.mubr.bf16.mxu0 %v7448_v44 }
 0x1c8   : > { %5684 = vmatmul.mubr.bf16.gmra.mrb[24].mxu1 %v3525_v34  ;;  %v8303_v34 = vld [vmem:[#allocation38_spill] sm:$0xff] }
 0x1c9   : > { %5687 = vmatprep.mubr.bf16.mxu1 %v3533_v55  ;;  %v8304_v55 = vld [vmem:[#allocation3_spill] sm:$0xff] }
 0x1cb   : > { %5472 = vmatmul.mubr.bf16.gmra.mrb[60].mxu0 %v7454_v53 }
 0x1cc   : > { %5475 = vmatprep.mubr.bf16.mxu0 %v8288_v14 }
 0x1d0   : > { %5688 = vmatmul.mubr.bf16.gmra.mrb[28].mxu1 %v3541_v2 }
 0x1d1   : > { %5707 = vmatprep.mubr.bf16.mxu1 %v3861_v38 }
 0x1d3   : > { %5476 = vmatmul.mubr.bf16.gmra.mrb[64].mxu0 %v7342_v33 }
 0x1d4   : > { %5479 = vmatprep.mubr.bf16.mxu0 %v8290_v3 }
 0x1d8   : > { %5708 = vmatmul.mubr.bf16.vlgmr.msra.gmra.mrb[32].mxu1 %v8292_v29 }
 0x1d9   : > { %5744 = vmatpush3.bf16.msra.mxu1 %v7736_v21  ;;  %5711 = vmatprep.mubr.bf16.mxu1 %v7385_v6  ;;  %v8294_v6 = vld [vmem:[#allocation30_spill] sm:$0xff]  ;;  %v6218_v21 = vld [vmem:[%s8101_s4 + $0x220] sm:$0xff]  }
 0x1da   : > { %5745 = vmatprep.subr.bf16.mxu1 %v6215_v23 }
 0x1db   : > { %5480 = vmatmul.mubr.bf16.gmra.mrb[68].mxu0 %v8293_v63 }
 0x1dc   : > { %5499 = vmatprep.mubr.bf16.mxu0 %v2200_v54 }
 0x1dd   : > { %5746 = vmatpush3.bf16.msra.mxu1 %v6215_v23 }
 0x1de   : > { %5747 = vmatprep.subr.bf16.mxu1 %v6216_v47 }
 0x1e0   : > { %5712 = vmatmul.mubr.bf16.gmra.mrb[0].mxu1 %v7397_v27  ;;  %v8296_v27 = vld [vmem:[#allocation31_spill] sm:$0xff] }
 0x1e1   : > { %5715 = vmatprep.mubr.bf16.mxu1 %v7400_v15  ;;  %5748 = vmatpush3.bf16.msra.mxu1 %v6216_v47  ;;  %v6219_v15 = vld [vmem:[%s8101_s4 + $0x228] sm:$0xff]  }
 0x1e2   : > { %5749 = vmatprep.subr.bf16.mxu1 %v6217_v56 }
 0x1e3   : > { %5500 = vmatmul.mubr.bf16.vlgmr.msra.gmra.mrb[36].mxu0 %v8294_v6 }
 0x1e4   : > { %5503 = vmatprep.mubr.bf16.mxu0 %v8295_v28  ;;  %5536 = vmatpush3.bf16.msra.mxu0 %v6224_v48  ;;  %v8297_v48 = vld [vmem:[#allocation32_spill] sm:$0xff] }
 0x1e5   : > { %5537 = vmatprep.subr.bf16.mxu0 %v6225_v1  ;;  %5750 = vmatpush3.bf16.msra.mxu1 %v6217_v56 }
 0x1e6   : > { %5751 = vmatprep.subr.bf16.mxu1 %v6218_v21 }
 0x1e8   : > { %5538 = vmatpush3.bf16.msra.mxu0 %v6225_v1  ;;  %5716 = vmatmul.mubr.bf16.gmra.mrb[4].mxu1 %v8296_v27 }
 0x1e9   : > { %5539 = vmatprep.subr.bf16.mxu0 %v6226_v61  ;;  %5719 = vmatprep.mubr.bf16.mxu1 %v8297_v48 }
 0x1ea   : > { %5752 = vmatpush3.bf16.msra.mxu1 %v6218_v21 }
 0x1eb   : > { %5504 = vmatmul.mubr.bf16.gmra.mrb[40].mxu0 %v7694_v58  ;;  %5753 = vmatprep.subr.bf16.mxu1 %v6219_v15  ;;  %v8298_v58 = vld [vmem:[#allocation33_spill] sm:$0xff] }
 0x1ec   : > { %5507 = vmatprep.mubr.bf16.mxu0 %v7723_v59  ;;  %5540 = vmatpush3.bf16.msra.mxu0 %v6226_v61  ;;  %v8299_v59 = vld [vmem:[#allocation34_spill] sm:$0xff] }
 0x1ed   : > { %5541 = vmatprep.subr.bf16.mxu0 %v6227_v7 }
 0x1ee   : > { %5754 = vmatpush3.bf16.msra.mxu1 %v6219_v15 }
 0x1ef   : > { %5755 = vmatprep.subr.bf16.mxu1 %v6220_v17 }
 0x1f0   : > { %5542 = vmatpush3.bf16.msra.mxu0 %v6227_v7  ;;  %5720 = vmatmul.mubr.bf16.gmra.mrb[8].mxu1 %v8298_v58  ;;  %v7981_v58 = vld [vmem:[%s8102_s5] ss:$0 sm:$0xff] }
 0x1f1   : > { %5543 = vmatprep.subr.bf16.mxu0 %v6228_v36  ;;  %5723 = vmatprep.mubr.bf16.mxu1 %v8299_v59 }
 0x1f2   : > { %5756 = vmatpush3.bf16.msra.mxu1 %v6220_v17 }
 0x1f3   : > { %5508 = vmatmul.mubr.bf16.gmra.mrb[44].mxu0 %v7728_v51  ;;  %5757 = vmatprep.subr.bf16.mxu1 %v6221_v26  ;;  %v6231_v51 = vld [vmem:[%s8101_s4 + $0x138] sm:$0xff]  }
 0x1f4   : > { %5511 = vmatprep.mubr.bf16.mxu0 %v7757_v60  ;;  %5544 = vmatpush3.bf16.msra.mxu0 %v6228_v36  ;;  %v8302_v60 = vld [vmem:[#allocation37_spill] sm:$0xff] }
 0x1f5   : > { %5545 = vmatprep.subr.bf16.mxu0 %v6229_v8 }
 0x1f6   : > { %5758 = vmatpush3.bf16.msra.mxu1 %v6221_v26 }
 0x1f8   : > { %5546 = vmatpush3.bf16.msra.mxu0 %v6229_v8  ;;  %5724 = vmatmul.mubr.bf16.gmra.mrb[12].mxu1 %v8300_v41 }
 0x1f9   : > { %5547 = vmatprep.subr.bf16.mxu0 %v6230_v20  ;;  %5727 = vmatprep.mubr.bf16.mxu1 %v8301_v46 }
 0x1fb   : > { %5512 = vmatmul.mubr.bf16.gmra.mrb[48].mxu0 %v7762_v30  ;;  %v8305_v30 = vld [vmem:[#allocation39_spill] sm:$0xff] }
 0x1fc   : > { %5515 = vmatprep.mubr.bf16.mxu0 %v7783_v22  ;;  %5548 = vmatpush3.bf16.msra.mxu0 %v6230_v20  ;;  %v8306_v22 = vld [vmem:[#allocation40_spill] sm:$0xff] }
 0x1fd   : > { %5549 = vmatprep.subr.bf16.mxu0 %v6231_v51 }
 0x200   : > { %5550 = vmatpush3.bf16.msra.mxu0 %v6231_v51  ;;  %5728 = vmatmul.mubr.bf16.gmra.mrb[16].mxu1 %v8302_v60 }
 0x201   : > { %5731 = vmatprep.mubr.bf16.mxu1 %v8303_v34 }
 0x203   : > { %5516 = vmatmul.mubr.bf16.gmra.mrb[52].mxu0 %v7787_v25  ;;  %v8311_v25 = vld [vmem:[#allocation16_spill] sm:$0xff] }
 0x204   : > { %5519 = vmatprep.mubr.bf16.mxu0 %v7433_v35  ;;  %v8308_v35 = vld [vmem:[#allocation10_spill] sm:$0xff] }
 0x208   : > { %5732 = vmatmul.mubr.bf16.gmra.mrb[20].mxu1 %v8304_v55 }
 0x209   : > { %5735 = vmatprep.mubr.bf16.mxu1 %v8305_v30 }
 0x20b   : > { %5520 = vmatmul.mubr.bf16.gmra.mrb[56].mxu0 %v7448_v44  ;;  %v8309_v44 = vld [vmem:[#allocation7_spill] sm:$0xff] }
 0x20c   : > { %5523 = vmatprep.mubr.bf16.mxu0 %v7454_v53  ;;  %v8310_v53 = vld [vmem:[#allocation9_spill] sm:$0xff] }
 0x210   : > { %5736 = vmatmul.mubr.bf16.gmra.mrb[24].mxu1 %v8306_v22 }
 0x211   : > { %5739 = vmatprep.mubr.bf16.mxu1 %v8307_v9 }
 0x213   : > { %5524 = vmatmul.mubr.bf16.gmra.mrb[60].mxu0 %v8288_v14 }
 0x214   : > { %5527 = vmatprep.mubr.bf16.mxu0 %v7342_v33  ;;  %v6232_v33 = vld [vmem:[#allocation2 + $0x18] sm:$0xff] }
 0x218   : > { %5740 = vmatmul.mubr.bf16.gmra.mrb[28].mxu1 %v7673_v18 }
 0x219   : > { %5759 = vmatprep.mubr.bf16.mxu1 %v7532_v24  ;;  %v4175_v24 = vld [vmem:[#allocation2 + $0xa8] sm:$0x3] }
 0x21a   : > { %v4274_v18 = vshll.u32 %v4175_v24, 16 }
 0x21b   : > { %5528 = vmatmul.mubr.bf16.gmra.mrb[64].mxu0 %v8290_v3 }
 0x21c   : > { %5531 = vmatprep.mubr.bf16.mxu0 %v8308_v35  ;;  %v4276_v14 = vrot.slane %v4274_v18, 2 }
 0x220   : > { %5760 = vmatmul.mubr.bf16.vlgmr.msra.gmra.mrb[32].mxu1 %v7524_v43  ;;  %v8313_v43 = vld [vmem:[#allocation42_spill] sm:$0xff] }
 0x221   : > { %5763 = vmatprep.mubr.bf16.mxu1 %v8309_v44 }
 0x223   : > { %5532 = vmatmul.mubr.bf16.gmra.mrb[68].mxu0 %v8310_v53 }
 0x224   : > { %5551 = vmatprep.mubr.bf16.mxu0 %v8291_v32 }
 0x228   : > { %5764 = vmatmul.mubr.bf16.gmra.mrb[0].mxu1 %v8311_v25 }
 0x229   : > { %5767 = vmatprep.mubr.bf16.mxu1 %v8312_v42 }
 0x22b   : > { %5552 = vmatmul.mubr.bf16.vlgmr.msra.gmra.mrb[36].mxu0 %v6232_v33 }
 0x230   : > { %5768 = vmatmul.mubr.bf16.gmra.mrb[4].mxu1 %v7552_v62  ;;  %v4271_v62 = vshrl.u32 %v4175_v24, 16 }
 0x231   : > { %5771 = vmatprep.mubr.bf16.mxu1 %v7566_v31 }
 0x232   : > { %v4273_v31 = vrot.slane %v4271_v62, 1 }
 0x238   : > { %5772 = vmatmul.mubr.bf16.gmra.mrb[8].mxu1 %v7575_v57  ;;  %v4277_v57 = vor.u32 %v4276_v14, %v4273_v31 }
 0x239   : > { %5775 = vmatprep.mubr.bf16.mxu1 %v7584_v10 }
 0x23a   : > { %v4278_v10 = vsel %vm4193_vm7, %v7628_v37, %v4277_v57 }
 0x240   : > { %5776 = vmatmul.mubr.bf16.gmra.mrb[12].mxu1 %v7592_v52 }
 0x241   : > { %5779 = vmatprep.mubr.bf16.mxu1 %v8313_v43 }
 0x248   : > { %5780 = vmatmul.mubr.bf16.gmra.mrb[16].mxu1 %v7601_v40 }
 0x249   : > { %5783 = vmatprep.mubr.bf16.mxu1 %v7620_v19 }
 0x250   : > { %5784 = vmatmul.mubr.bf16.gmra.mrb[20].mxu1 %v7626_v39 }
 0x251   : > { %5787 = vmatprep.mubr.bf16.mxu1 %v7636_v11 }
 0x258   : > { %5788 = vmatmul.mubr.bf16.gmra.mrb[24].mxu1 %v7643_v50 }
 0x259   : > { %5791 = vmatprep.mubr.bf16.mxu1 %v7647_v5 }
 0x260   : > { %5792 = vmatmul.mubr.bf16.gmra.mrb[28].mxu1 %v4278_v10 }
 0x2be   : > { %v5505_v52 = vpop.f32.mrb[40].mxu0 }
 0x2bf   : > { %v2453_v40 = vpop.f32.mrb[41].mxu0 }
 0x2c0   : > { %v5506_v19 = vpop.f32.mrb[42].mxu0 }
 0x2c1   : > { %v2456_v2 = vpop.f32.mrb[43].mxu0 }
 0x2c6   : > { %v7921_v39 = vpop.f32.mrb[44].mxu0 }
 0x2c7   : > { %v7923_v11 = vpop.f32.mrb[45].mxu0 }
 0x2c8   : > { %v7925_v45 = vpop.f32.mrb[46].mxu0 }
 0x2c9   : > { %v7927_v16 = vpop.f32.mrb[47].mxu0 }
 0x2ce   : > { %v7929_v50 = vpop.f32.mrb[48].mxu0 }
 0x2cf   : > { %v7931_v5 = vpop.f32.mrb[49].mxu0 }
 0x2d0   : > { %v7933_v12 = vpop.f32.mrb[50].mxu0 }
 0x2d1   : > { %v7935_v37 = vpop.f32.mrb[51].mxu0 }
 0x2d6   : > { %v7937_v38 = vpop.f32.mrb[52].mxu0 }
 0x2d7   : > { %v7939_v0 = vpop.f32.mrb[53].mxu0 }
 0x2d8   : > { %v7941_v3 = vpop.f32.mrb[54].mxu0 }
 0x2d9   : > { %v7943_v32 = vpop.f32.mrb[55].mxu0 }
 0x2de   : > { %v7945_v4 = vpop.f32.mrb[56].mxu0 }
 0x2df   : > { %v7947_v13 = vpop.f32.mrb[57].mxu0 }
 0x2e0   : > { %v7949_v49 = vpop.f32.mrb[58].mxu0 }
 0x2e1   : > { %v7951_v23 = vpop.f32.mrb[59].mxu0 }
 0x2e6   : > { %v7953_v29 = vpop.f32.mrb[60].mxu0 }
 0x2e7   : > { %v7955_v63 = vpop.f32.mrb[61].mxu0 }
 0x2e8   : > { %v7957_v54 = vpop.f32.mrb[62].mxu0 }
 0x2e9   : > { %v7959_v47 = vpop.f32.mrb[63].mxu0 }
 0x2ee   : > { %v7961_v56 = vpop.f32.mrb[64].mxu0 }
 0x2ef   : > { %v7963_v6 = vpop.f32.mrb[65].mxu0 }
 0x2f0   : > { %v7965_v21 = vpop.f32.mrb[66].mxu0 }
 0x2f1   : > { %v7967_v28 = vpop.f32.mrb[67].mxu0 }
 0x2f3   : > { %v5761_v1 = vpop.f32.mrb[32].mxu1 }
 0x2f4   : > { %v4379_v15 = vpop.f32.mrb[33].mxu1 }
 0x2f5   : > { %v5762_v61 = vpop.f32.mrb[34].mxu1 }
 0x2f6   : > { %v7969_v27 = vpop.f32.mrb[68].mxu0  ;;  %v4382_v17 = vpop.f32.mrb[35].mxu1 }
 0x2f7   : > { %v7971_v48 = vpop.f32.mrb[69].mxu0 }
 0x2f8   : > { %v7973_v7 = vpop.f32.mrb[70].mxu0 }
 0x2f9   : > { %v7975_v26 = vpop.f32.mrb[71].mxu0 }
 0x2fb   : > { %v5765_v36 = vpop.f32.mrb[0].mxu1 }
 0x2fc   : > { %v5815_v59 = vadd.f32 %v5765_v36, %v5505_v52  ;;  %v4395_v8 = vpop.f32.mrb[1].mxu1 }
 0x2fd   : > { %v5816_v20 = vadd.f32 %v4395_v8, %v2453_v40  ;;  %v5766_v46 = vpop.f32.mrb[2].mxu1 }
 0x2fe   : > { %v5553_v41 = vpop.f32.mrb[36].mxu0  ;;  %v4571_v34 = vadd.f32 %v5815_v59, %v7981_v58  ;;  %v5817_v55 = vadd.f32 %v5766_v46, %v5506_v19  ;;  %v4398_v30 = vpop.f32.mrb[3].mxu1 }
 0x2ff   : > { %v5811_v51 = vadd.f32 %v5761_v1, %v5553_v41  ;;  %v2715_v60 = vpop.f32.mrb[37].mxu0  ;;  %v4569_v35 = vadd.f32 %v5816_v20, %v7981_v58  ;;  %v5818_v44 = vadd.f32 %v4398_v30, %v2456_v2 }
 0x300   : > { %v5812_v22 = vadd.f32 %v4379_v15, %v2715_v60  ;;  %v5554_v9 = vpop.f32.mrb[38].mxu0  ;;  %v4607_v33 = vmax.f32 %v4571_v34, 0.0  ;;  %v4572_v43 = vadd.f32 %v5817_v55, %v7981_v58 }
 0x301   : > { %v4567_v53 = vadd.f32 %v5811_v51, %v7981_v58  ;;  %v5813_v25 = vadd.f32 %v5762_v61, %v5554_v9  ;;  %v2718_v42 = vpop.f32.mrb[39].mxu0  ;;  %v4605_v18 = vmax.f32 %v4569_v35, 0.0  ;;  %v4570_v31 = vadd.f32 %v5818_v44, %v7981_v58 }
 0x302   : > { %v4565_v24 = vadd.f32 %v5812_v22, %v7981_v58  ;;  %v5814_v62 = vadd.f32 %v4382_v17, %v2718_v42  ;;  %4643 = vst [vmem:[%s7987_s21 + $0x30] sm:$0xff] %v4607_v33  ;;  %v4608_v10 = vmax.f32 %v4572_v43, 0.0 }
 0x303   : > { %v4603_v14 = vmax.f32 %v4567_v53, 0.0  ;;  %v4568_v57 = vadd.f32 %v5813_v25, %v7981_v58  ;;  %4641 = vst [vmem:[%s7987_s21 + $0x20] sm:$0xff] %v4605_v18  ;;  %v4606_v19 = vmax.f32 %v4570_v31, 0.0  ;;  %v5769_v2 = vpop.f32.mrb[4].mxu1 }
 0x304   : > { %v4601_v52 = vmax.f32 %v4565_v24, 0.0  ;;  %v4566_v40 = vadd.f32 %v5814_v62, %v7981_v58  ;;  %4644 = vst [vmem:[%s7987_s21 + $0x38] sm:$0xff] %v4608_v10  ;;  %v5819_v15 = vadd.f32 %v5769_v2, %v7921_v39  ;;  %v4411_v61 = vpop.f32.mrb[5].mxu1 }
 0x305   : > { %4639 = vst [vmem:[%s7987_s21 + $0x10] sm:$0xff] %v4603_v14  ;;  %v4604_v1 = vmax.f32 %v4568_v57, 0.0  ;;  %4642 = vst [vmem:[%s7987_s21 + $0x28] sm:$0xff] %v4606_v19  ;;  %v5820_v36 = vadd.f32 %v4411_v61, %v7923_v11  ;;  %v5770_v59 = vpop.f32.mrb[6].mxu1 }
 0x306   : > { %4637 = vst [vmem:[%s7987_s21] sm:$0xff] %v4601_v52  ;;  %v4602_v17 = vmax.f32 %v4566_v40, 0.0  ;;  %v4575_v8 = vadd.f32 %v5819_v15, %v7981_v58  ;;  %v5821_v41 = vadd.f32 %v5770_v59, %v7925_v45  ;;  %v4414_v20 = vpop.f32.mrb[7].mxu1 }
 0x307   : > { %4640 = vst [vmem:[%s7987_s21 + $0x18] sm:$0xff] %v4604_v1  ;;  %v4573_v39 = vadd.f32 %v5820_v36, %v7981_v58  ;;  %v5822_v46 = vadd.f32 %v4414_v20, %v7927_v16 }
 0x308   : > { %4638 = vst [vmem:[%s7987_s21 + $0x8] sm:$0xff] %v4602_v17  ;;  %v4611_v51 = vmax.f32 %v4575_v8, 0.0  ;;  %v4576_v60 = vadd.f32 %v5821_v41, %v7981_v58 }
 0x309   : > { %v4609_v34 = vmax.f32 %v4573_v39, 0.0  ;;  %v4574_v11 = vadd.f32 %v5822_v46, %v7981_v58 }
 0x30a   : > { %4647 = vst [vmem:[%s7987_s21 + $0x50] sm:$0xff] %v4611_v51  ;;  %v4612_v55 = vmax.f32 %v4576_v60, 0.0 }
 0x30b   : > { %4645 = vst [vmem:[%s7987_s21 + $0x40] sm:$0xff] %v4609_v34  ;;  %v4610_v30 = vmax.f32 %v4574_v11, 0.0  ;;  %v5773_v22 = vpop.f32.mrb[8].mxu1 }
 0x30c   : > { %4648 = vst [vmem:[%s7987_s21 + $0x58] sm:$0xff] %v4612_v55  ;;  %v5823_v45 = vadd.f32 %v5773_v22, %v7929_v50  ;;  %v4427_v9 = vpop.f32.mrb[9].mxu1 }
 0x30d   : > { %4646 = vst [vmem:[%s7987_s21 + $0x48] sm:$0xff] %v4610_v30  ;;  %v5824_v16 = vadd.f32 %v4427_v9, %v7931_v5  ;;  %v5774_v35 = vpop.f32.mrb[10].mxu1 }
 0x30e   : > { %v4579_v44 = vadd.f32 %v5823_v45, %v7981_v58  ;;  %v5825_v53 = vadd.f32 %v5774_v35, %v7933_v12  ;;  %v4430_v25 = vpop.f32.mrb[11].mxu1 }
 0x30f   : > { %v4577_v42 = vadd.f32 %v5824_v16, %v7981_v58  ;;  %v5826_v33 = vadd.f32 %v4430_v25, %v7935_v37 }
 0x310   : > { %v4615_v43 = vmax.f32 %v4579_v44, 0.0  ;;  %v4580_v50 = vadd.f32 %v5825_v53, %v7981_v58 }
 0x311   : > { %v4613_v24 = vmax.f32 %v4577_v42, 0.0  ;;  %v4578_v62 = vadd.f32 %v5826_v33, %v7981_v58 }
 0x312   : > { %4651 = vst [vmem:[%s7987_s21 + $0x70] sm:$0xff] %v4615_v43  ;;  %v4616_v5 = vmax.f32 %v4580_v50, 0.0 }
 0x313   : > { %4649 = vst [vmem:[%s7987_s21 + $0x60] sm:$0xff] %v4613_v24  ;;  %v4614_v18 = vmax.f32 %v4578_v62, 0.0  ;;  %v5777_v31 = vpop.f32.mrb[12].mxu1 }
 0x314   : > { %4652 = vst [vmem:[%s7987_s21 + $0x78] sm:$0xff] %v4616_v5  ;;  %v5827_v12 = vadd.f32 %v5777_v31, %v7937_v38  ;;  %v4443_v14 = vpop.f32.mrb[13].mxu1 }
 0x315   : > { %4650 = vst [vmem:[%s7987_s21 + $0x68] sm:$0xff] %v4614_v18  ;;  %v5828_v37 = vadd.f32 %v4443_v14, %v7939_v0  ;;  %v5778_v57 = vpop.f32.mrb[14].mxu1 }
 0x316   : > { %v4583_v10 = vadd.f32 %v5827_v12, %v7981_v58  ;;  %v5829_v52 = vadd.f32 %v5778_v57, %v7941_v3  ;;  %v4446_v40 = vpop.f32.mrb[15].mxu1 }
 0x317   : > { %v4581_v19 = vadd.f32 %v5828_v37, %v7981_v58  ;;  %v5830_v2 = vadd.f32 %v4446_v40, %v7943_v32 }
 0x318   : > { %v4619_v1 = vmax.f32 %v4583_v10, 0.0  ;;  %v4584_v38 = vadd.f32 %v5829_v52, %v7981_v58 }
 0x319   : > { %v4617_v15 = vmax.f32 %v4581_v19, 0.0  ;;  %v4582_v61 = vadd.f32 %v5830_v2, %v7981_v58 }
 0x31a   : > { %4655 = vst [vmem:[%s7987_s21 + $0x90] sm:$0xff] %v4619_v1  ;;  %v4620_v0 = vmax.f32 %v4584_v38, 0.0 }
 0x31b   : > { %4653 = vst [vmem:[%s7987_s21 + $0x80] sm:$0xff] %v4617_v15  ;;  %v4618_v17 = vmax.f32 %v4582_v61, 0.0  ;;  %v5781_v36 = vpop.f32.mrb[16].mxu1 }
 0x31c   : > { %4656 = vst [vmem:[%s7987_s21 + $0x98] sm:$0xff] %v4620_v0  ;;  %v5831_v3 = vadd.f32 %v5781_v36, %v7945_v4  ;;  %v4459_v59 = vpop.f32.mrb[17].mxu1 }
 0x31d   : > { %4654 = vst [vmem:[%s7987_s21 + $0x88] sm:$0xff] %v4618_v17  ;;  %v5832_v32 = vadd.f32 %v4459_v59, %v7947_v13  ;;  %v5782_v8 = vpop.f32.mrb[18].mxu1 }
 0x31e   : > { %v4587_v41 = vadd.f32 %v5831_v3, %v7981_v58  ;;  %v5833_v20 = vadd.f32 %v5782_v8, %v7949_v49  ;;  %v4462_v39 = vpop.f32.mrb[19].mxu1 }
 0x31f   : > { %v4585_v46 = vadd.f32 %v5832_v32, %v7981_v58  ;;  %v5834_v51 = vadd.f32 %v4462_v39, %v7951_v23 }
 0x320   : > { %v4623_v60 = vmax.f32 %v4587_v41, 0.0  ;;  %v4588_v4 = vadd.f32 %v5833_v20, %v7981_v58 }
 0x321   : > { %v4621_v34 = vmax.f32 %v4585_v46, 0.0  ;;  %v4586_v11 = vadd.f32 %v5834_v51, %v7981_v58 }
 0x322   : > { %4659 = vst [vmem:[%s7987_s21 + $0xb0] sm:$0xff] %v4623_v60  ;;  %v4624_v13 = vmax.f32 %v4588_v4, 0.0 }
 0x323   : > { %4657 = vst [vmem:[%s7987_s21 + $0xa0] sm:$0xff] %v4621_v34  ;;  %v4622_v55 = vmax.f32 %v4586_v11, 0.0  ;;  %v5785_v30 = vpop.f32.mrb[20].mxu1 }
 0x324   : > { %4660 = vst [vmem:[%s7987_s21 + $0xb8] sm:$0xff] %v4624_v13  ;;  %v5835_v49 = vadd.f32 %v5785_v30, %v7953_v29  ;;  %v4475_v22 = vpop.f32.mrb[21].mxu1 }
 0x325   : > { %4658 = vst [vmem:[%s7987_s21 + $0xa8] sm:$0xff] %v4622_v55  ;;  %v5836_v23 = vadd.f32 %v4475_v22, %v7955_v63  ;;  %v5786_v45 = vpop.f32.mrb[22].mxu1 }
 0x326   : > { %v4591_v9 = vadd.f32 %v5835_v49, %v7981_v58  ;;  %v5837_v16 = vadd.f32 %v5786_v45, %v7957_v54  ;;  %v4478_v35 = vpop.f32.mrb[23].mxu1 }
 0x327   : > { %v4589_v44 = vadd.f32 %v5836_v23, %v7981_v58  ;;  %v5838_v53 = vadd.f32 %v4478_v35, %v7959_v47 }
 0x328   : > { %v4627_v25 = vmax.f32 %v4591_v9, 0.0  ;;  %v4592_v29 = vadd.f32 %v5837_v16, %v7981_v58 }
 0x329   : > { %v4625_v42 = vmax.f32 %v4589_v44, 0.0  ;;  %v4590_v33 = vadd.f32 %v5838_v53, %v7981_v58 }
 0x32a   : > { %4663 = vst [vmem:[%s7987_s21 + $0xd0] sm:$0xff] %v4627_v25  ;;  %v4628_v63 = vmax.f32 %v4592_v29, 0.0 }
 0x32b   : > { %4661 = vst [vmem:[%s7987_s21 + $0xc0] sm:$0xff] %v4625_v42  ;;  %v4626_v43 = vmax.f32 %v4590_v33, 0.0  ;;  %v5789_v50 = vpop.f32.mrb[24].mxu1 }
 0x32c   : > { %4664 = vst [vmem:[%s7987_s21 + $0xd8] sm:$0xff] %v4628_v63  ;;  %v5839_v54 = vadd.f32 %v5789_v50, %v7961_v56  ;;  %v4491_v24 = vpop.f32.mrb[25].mxu1 }
 0x32d   : > { %4662 = vst [vmem:[%s7987_s21 + $0xc8] sm:$0xff] %v4626_v43  ;;  %v5840_v47 = vadd.f32 %v4491_v24, %v7963_v6  ;;  %v5790_v62 = vpop.f32.mrb[26].mxu1 }
 0x32e   : > { %v4595_v5 = vadd.f32 %v5839_v54, %v7981_v58  ;;  %v5841_v18 = vadd.f32 %v5790_v62, %v7965_v21  ;;  %v4494_v31 = vpop.f32.mrb[27].mxu1 }
 0x32f   : > { %v4593_v12 = vadd.f32 %v5840_v47, %v7981_v58  ;;  %v5842_v14 = vadd.f32 %v4494_v31, %v7967_v28 }
 0x330   : > { %v4631_v37 = vmax.f32 %v4595_v5, 0.0  ;;  %v4596_v56 = vadd.f32 %v5841_v18, %v7981_v58 }
 0x331   : > { %v4629_v57 = vmax.f32 %v4593_v12, 0.0  ;;  %v4594_v10 = vadd.f32 %v5842_v14, %v7981_v58 }
 0x332   : > { %4667 = vst [vmem:[%s7987_s21 + $0xf0] sm:$0xff] %v4631_v37  ;;  %v4632_v6 = vmax.f32 %v4596_v56, 0.0 }
 0x333   : > { %4665 = vst [vmem:[%s7987_s21 + $0xe0] sm:$0xff] %v4629_v57  ;;  %v4630_v52 = vmax.f32 %v4594_v10, 0.0  ;;  %v5793_v40 = vpop.f32.mrb[28].mxu1 }
 0x334   : > { %4668 = vst [vmem:[%s7987_s21 + $0xf8] sm:$0xff] %v4632_v6  ;;  %v5843_v21 = vadd.f32 %v5793_v40, %v7969_v27  ;;  %v4507_v19 = vpop.f32.mrb[29].mxu1 }
 0x335   : > { %4666 = vst [vmem:[%s7987_s21 + $0xe8] sm:$0xff] %v4630_v52  ;;  %v5844_v28 = vadd.f32 %v4507_v19, %v7971_v48  ;;  %v5794_v2 = vpop.f32.mrb[30].mxu1 }
 0x336   : > { %v4599_v1 = vadd.f32 %v5843_v21, %v7981_v58  ;;  %v5845_v38 = vadd.f32 %v5794_v2, %v7973_v7  ;;  %v4510_v15 = vpop.f32.mrb[31].mxu1 }
 0x337   : > { %v4597_v61 = vadd.f32 %v5844_v28, %v7981_v58  ;;  %v5846_v0 = vadd.f32 %v4510_v15, %v7975_v26 }
 0x338   : > { %v4635_v17 = vmax.f32 %v4599_v1, 0.0  ;;  %v4600_v27 = vadd.f32 %v5845_v38, %v7981_v58 }
 0x339   : > { %v4633_v36 = vmax.f32 %v4597_v61, 0.0  ;;  %v4598_v3 = vadd.f32 %v5846_v0, %v7981_v58 }
 0x33a   : > { %4671 = vst [vmem:[%s7987_s21 + $0x110] sm:$0xff] %v4635_v17  ;;  %v4636_v59 = vmax.f32 %v4600_v27, 0.0 }
 0x33b   : > { %4669 = vst [vmem:[%s7987_s21 + $0x100] sm:$0xff] %v4633_v36  ;;  %v4634_v48 = vmax.f32 %v4598_v3, 0.0 }
 0x33c   : > { %4672 = vst [vmem:[%s7987_s21 + $0x118] sm:$0xff] %v4636_v59 }
 0x33d   : > { %4670 = vst [vmem:[%s7987_s21 + $0x108] sm:$0xff] %v4634_v48 }
 0x33e PF: > { %s16_s23 = sadd.s32 1, %s6255_s23   ;;  %s8314_s21 = smov %s6251_s22 }
 0x33f   : > { %p13_p5 = scmp.ge.s32.totalorder %s16_s23, 4   ;;  %s8315_s22 = smov %s8317_s24 }
 0x341   :  { %15 = sbr.rel (!%p13_p5) target bundleno = 2 (0x2), region = 92 }

</bundles_post_ra>
